<compile_context>
chip_gen: v7x
topology: tpu7x:2x2x1
jax: 0.10.0
libtpu: 0.0.40
codegen_flags: <defaults>
</compile_context>

<pallas_src>
from collections import namedtuple

import jax
import jax.numpy as jnp
from jax import lax
from jax.experimental import pallas as pl
from jax.experimental.pallas import tpu as pltpu


# ---------------------------------------------------------------------------
# helpers
# ---------------------------------------------------------------------------
def _argmax_last(a):
    """First-occurrence argmax over the last axis (matches torch/jnp argmax)."""
    L = a.shape[-1]
    idx = lax.broadcasted_iota(jnp.int32, a.shape, a.ndim - 1)
    m = jnp.max(a, axis=-1, keepdims=True)
    return jnp.min(jnp.where(a == m, idx, L), axis=-1)


def _vmem_limit_bytes():
    """Generation-aware scoped-VMEM budget: ~48 MiB on v7x (64 MiB/TC), up to 96 MiB on v5e/v6e."""
    try:
        cap = pltpu.get_tpu_info().vmem_capacity_bytes
    except Exception:
        cap = 64 * 1024 * 1024          # conservative fallback (v7x-sized)
    return int(min(cap * 3 // 4, 96 * 1024 * 1024))


def _pick_tt(b, T, c, HW, KL, vmem_limit):
    """Frames per block: fill the per-generation VMEM budget, keep the second-minor
    block dim 8-aligned (or == T), and keep >=2 total grid steps for v7x megacore."""
    per_frame = c * HW * 4 + 3 * KL * 4          # x tile + in-kernel logits / argmax temps
    budget = max(vmem_limit // 8, 1 << 20)       # x is double-buffered -> <= vmem_limit/4
    tt = max(1, budget // per_frame)
    if b == 1 and T > 8:                         # ensure >=2 grid steps (v7x has 2 TCs)
        tt = min(tt, ((pl.cdiv(T, 2) + 7) // 8) * 8)
    tt = min(tt, T)
    if tt < T:
        tt = max(8, (tt // 8) * 8)               # 8-aligned when not the full axis
        tt = min(tt, T)
    return tt


# ---------------------------------------------------------------------------
# ONE fused kernel: raw NCTHW video -> fused feats (backbone stub + pose stub
# + FusionA), the video is read from HBM exactly once, logits stay in VMEM.
# ---------------------------------------------------------------------------
def dual_task_encode(x, params):
    """x: (b, c, T, H, W) float32 -> feats (b, T, C) float32."""
    b, c, T, H, W = x.shape
    HW = H * W
    C = params["feats_dim"]
    hidden = params["hidden_dim"]
    K = params["num_keypoints"]
    Wl = params["simcc_x"]
    Hl = params["simcc_y"]
    KL = K * (Wl + Hl)
    inv_hw = 1.0 / float(HW)

    vmem_limit = _vmem_limit_bytes()
    tt = _pick_tt(b, T, c, HW, KL, vmem_limit)
    n_tb = pl.cdiv(T, tt)

    # Free contiguous collapse: lane-dense (tt, HW) rows instead of (tt, H, W).
    x_flat = x.reshape(b, c, T, HW)
    w_res_flat = params["w_resize"].reshape(1, HW)

    def kernel(x_ref, wres_ref, wbb_ref, bbb_ref,
               wlx_ref, blx_ref, wly_ref, bly_ref,
               ln_ref, wxa_ref, wya_ref, ba_ref, w2_ref, b2_ref,
               wggp_ref, wgf_ref, bg_ref, o_ref):
        wr = wres_ref[...]                                       # (1, HW) resize+mean fold
        f_acc = None
        lx_acc = None
        ly_acc = None
        # c is tiny & static -> unrolled VPU broadcast-MACs; fully hidden under the
        # HBM-bound DMA (kept on VPU rather than MXU to stay reduce-exact in f32).
        for ch in range(c):
            xc = x_ref[ch]                                       # (tt, HW) lane-dense
            s_u = jnp.sum(xc, axis=-1, keepdims=True) * inv_hw   # backbone stub spatial mean
            s_r = jnp.sum(xc * wr, axis=-1, keepdims=True)       # == mean(resize_256x192(x))
            f_t = s_u * wbb_ref[ch:ch + 1, :]                    # (tt, C)
            lx_t = s_r[:, :, None] * wlx_ref[ch]                 # (tt, K, Wl)
            ly_t = s_r[:, :, None] * wly_ref[ch]                 # (tt, K, Hl)
            f_acc = f_t if f_acc is None else f_acc + f_t
            lx_acc = lx_t if lx_acc is None else lx_acc + lx_t
            ly_acc = ly_t if ly_acc is None else ly_acc + ly_t
        feats1 = f_acc + bbb_ref[...]                            # (tt, C)  backbone feats
        lx = lx_acc + blx_ref[...]                               # (tt, K, Wl) SimCC x logits
        ly = ly_acc + bly_ref[...]                               # (tt, K, Hl) SimCC y logits

        # ---- FusionA, fused on-chip (logits never reach HBM) ----
        # torch.no_grad(): argmax over SimCC logits, cast to feats dtype
        xi = _argmax_last(lx).astype(jnp.float32)                # (tt, K)
        yi = _argmax_last(ly).astype(jnp.float32)                # (tt, K)

        # LayerNorm over the 2K interleaved coords (even = x, odd = y; eps = 1e-5)
        ln = ln_ref[...]                                         # (4, K): gx, gy, bx, by
        two_k = 2.0 * K
        mean = (jnp.sum(xi, -1, keepdims=True) + jnp.sum(yi, -1, keepdims=True)) / two_k
        var = (jnp.sum((xi - mean) ** 2, -1, keepdims=True)
               + jnp.sum((yi - mean) ** 2, -1, keepdims=True)) / two_k
        inv = lax.rsqrt(var + 1e-5)
        xn = (xi - mean) * inv * ln[0:1, :] + ln[2:3, :]
        yn = (yi - mean) * inv * ln[1:2, :] + ln[3:4, :]

        def mm(a, w):
            return jnp.dot(a, w, preferred_element_type=jnp.float32)

        # keypoints_proj.0 and gate_preproj share the LHS -> one wide matmul per side
        hg = mm(xn, wxa_ref[...]) + mm(yn, wya_ref[...]) + ba_ref[...]   # (tt, hidden + C)
        h = hg[:, :hidden]
        gp = hg[:, hidden:]
        kp = mm(h, w2_ref[...]) + b2_ref[...]                            # (tt, C)

        # gate_estimator: sigmoid(Linear(2C->2C)([gate_proj, feats])) as two fused matmuls
        gate = jax.nn.sigmoid(mm(gp, wggp_ref[...]) + mm(feats1, wgf_ref[...]) + bg_ref[...])
        gate_kp = gate[:, :C]
        gate_f = gate[:, C:]

        # feats = gate_feats * feats + gate_keypoints * keypoints_proj(xy)
        o_ref[...] = gate_f * feats1 + gate_kp * kp

    return pl.pallas_call(
        kernel,
        out_shape=jax.ShapeDtypeStruct((b, T, C), jnp.float32),
        grid=(b, n_tb),
        in_specs=[
            # index straight into the original NCTHW video: one HBM pass, no transpose
            pl.BlockSpec((None, c, tt, HW), lambda bi, ti: (bi, 0, ti, 0)),
            pl.BlockSpec((1, HW), lambda bi, ti: (0, 0)),
            pl.BlockSpec((c, C), lambda bi, ti: (0, 0)),
            pl.BlockSpec((1, C), lambda bi, ti: (0, 0)),
            pl.BlockSpec((c, K, Wl), lambda bi, ti: (0, 0, 0)),
            pl.BlockSpec((K, Wl), lambda bi, ti: (0, 0)),
            pl.BlockSpec((c, K, Hl), lambda bi, ti: (0, 0, 0)),
            pl.BlockSpec((K, Hl), lambda bi, ti: (0, 0)),
            pl.BlockSpec((4, K), lambda bi, ti: (0, 0)),
            pl.BlockSpec((K, hidden + C), lambda bi, ti: (0, 0)),
            pl.BlockSpec((K, hidden + C), lambda bi, ti: (0, 0)),
            pl.BlockSpec((1, hidden + C), lambda bi, ti: (0, 0)),
            pl.BlockSpec((hidden, C), lambda bi, ti: (0, 0)),
            pl.BlockSpec((1, C), lambda bi, ti: (0, 0)),
            pl.BlockSpec((C, 2 * C), lambda bi, ti: (0, 0)),
            pl.BlockSpec((C, 2 * C), lambda bi, ti: (0, 0)),
            pl.BlockSpec((1, 2 * C), lambda bi, ti: (0, 0)),
        ],
        out_specs=pl.BlockSpec((None, tt, C), lambda bi, ti: (bi, ti, 0)),
        compiler_params=pltpu.CompilerParams(
            dimension_semantics=("parallel", "parallel"),
            vmem_limit_bytes=vmem_limit,
        ),
    )(x_flat, w_res_flat, params["w_bb"], params["b_bb"],
      params["w_px"], params["b_px"], params["w_py"], params["b_py"],
      params["ln_pack"], params["w_xa"], params["w_ya"], params["b_a"],
      params["w_kp2"], params["b_kp2_row"], params["w_ge_gp"], params["w_ge_f"],
      params["b_ge_row"])


# ---------------------------------------------------------------------------
# Parameter construction (deterministic, synthetic)
# ---------------------------------------------------------------------------
def init_params(key, *, c_in, img_h, img_w, num_keypoints, feats_dim, hidden_dim,
                simcc_x, simcc_y, resize_hw=(256, 192)):
    ks = jax.random.split(key, 14)
    s = 0.05
    K, C, Hd = num_keypoints, feats_dim, hidden_dim
    K2 = 2 * K
    f32 = jnp.float32

    # ----- FusionA parameters (torch interleaved '(k xy)' layout, (in, out) orientation) -----
    ln_g = jnp.ones((K2,), f32)                              # LayerNorm gamma (torch default)
    ln_b = jnp.zeros((K2,), f32)                             # LayerNorm beta
    w_kp1 = s * jax.random.normal(ks[0], (K2, Hd), f32)
    b_kp1 = s * jax.random.normal(ks[1], (Hd,), f32)
    w_kp2 = s * jax.random.normal(ks[2], (Hd, C), f32)
    b_kp2 = s * jax.random.normal(ks[3], (C,), f32)
    w_gp = s * jax.random.normal(ks[4], (K2, C), f32)
    b_gp = s * jax.random.normal(ks[5], (C,), f32)
    w_ge = s * jax.random.normal(ks[6], (2 * C, 2 * C), f32)
    b_ge = s * jax.random.normal(ks[7], (2 * C,), f32)

    # ----- stubs for the external pretrained modules -----
    # TODO(synk): VisualBackbone is an external pretrained net; stubbed as spatial-mean +
    # Linear(c -> C) with no temporal downsampling (so t_length passes through unchanged).
    w_bb = s * jax.random.normal(ks[8], (c_in, C), f32)
    b_bb = s * jax.random.normal(ks[9], (C,), f32)
    # TODO(synk): DWPoseWarpper(pose_cfg, pose_ckpt) is an external pretrained pose net;
    # stubbed as linear SimCC heads on the resize(256x192)+mean-pooled frame.
    w_px = s * jax.random.normal(ks[10], (c_in, K, simcc_x), f32)
    b_px = s * jax.random.normal(ks[11], (K, simcc_x), f32)
    w_py = s * jax.random.normal(ks[12], (c_in, K, simcc_y), f32)
    b_py = s * jax.random.normal(ks[13], (K, simcc_y), f32)

    # Fold VF.resize([256,192]) + spatial mean into one (H, W) weight map (resize is linear):
    #   mean_hw(resize(img)) == sum_hw(img * w_resize), w_resize = A^T @ (1/N).
    rh, rw = resize_hw
    _, resize_vjp = jax.vjp(lambda im: jax.image.resize(im, (rh, rw), method="bilinear"),
                            jnp.zeros((img_h, img_w), f32))
    (w_resize,) = resize_vjp(jnp.full((rh, rw), 1.0 / (rh * rw), f32))

    # ----- kernel-side packing: even rows act on x, odd on y; concat shared-LHS weights -----
    ln_pack = jnp.stack([ln_g[0::2], ln_g[1::2], ln_b[0::2], ln_b[1::2]], axis=0)   # (4, K)
    w_xa = jnp.concatenate([w_kp1[0::2], w_gp[0::2]], axis=1)                        # (K, Hd+C)
    w_ya = jnp.concatenate([w_kp1[1::2], w_gp[1::2]], axis=1)                        # (K, Hd+C)
    b_a = jnp.concatenate([b_kp1, b_gp])[None, :]                                    # (1, Hd+C)

    return dict(
        # kernel-packed params
        w_resize=w_resize, w_bb=w_bb, b_bb=b_bb[None, :],
        w_px=w_px, b_px=b_px, w_py=w_py, b_py=b_py,
        ln_pack=ln_pack, w_xa=w_xa, w_ya=w_ya, b_a=b_a,
        w_kp2=w_kp2, b_kp2_row=b_kp2[None, :],
        w_ge_gp=w_ge[:C, :], w_ge_f=w_ge[C:, :], b_ge_row=b_ge[None, :],
        # raw params (only for the pure-JAX reference / checks)
        ln_g=ln_g, ln_b=ln_b, w_kp1=w_kp1, b_kp1=b_kp1, b_kp2=b_kp2,
        w_gp=w_gp, b_gp=b_gp, w_ge=w_ge, b_ge=b_ge, b_bb_vec=b_bb,
        # static config
        num_keypoints=K, feats_dim=C, hidden_dim=Hd,
        simcc_x=simcc_x, simcc_y=simcc_y, resize_hw=resize_hw,
    )


# ---------------------------------------------------------------------------
# DualTaskStreamEncoder forward
# ---------------------------------------------------------------------------
DualTaskStreamEncoderOut = namedtuple("DualTaskStreamEncoderOut", ["out", "t_length"])


def dual_task_stream_encoder(x, t_length, params):
    """x: (b, c, t, h, w) float32, t_length: (b,) int32 -> (out (b, c_feat, t), t_length)."""
    feats = dual_task_encode(x, params)          # (b, T, C): one fused pallas_call
    out = jnp.transpose(feats, (0, 2, 1))        # '(b t) c -> b c t' (tiny vs. the video)
    # TODO(synk): like the reference module, padded frames (t >= t_length) are still encoded;
    # masking (if any) happens downstream, t_length is only threaded through.
    return DualTaskStreamEncoderOut(out, t_length)


# ---------------------------------------------------------------------------
# Pure-JAX/XLA reference (same stubs, exact torch FusionA semantics)
# ---------------------------------------------------------------------------
def reference_forward(x, params):
    b, c, T, H, W = x.shape
    K, C = params["num_keypoints"], params["feats_dim"]
    bt = b * T
    xf = jnp.transpose(x, (0, 2, 1, 3, 4)).reshape(bt, c, H, W)   # 'b c t h w -> (b t) c h w'
    feats1 = jnp.mean(xf, axis=(2, 3)) @ params["w_bb"] + params["b_bb_vec"]
    pooled = jnp.sum(xf * params["w_resize"], axis=(2, 3))        # == mean(resize(x, 256x192))
    lx = jnp.einsum('bc,ckw->bkw', pooled, params["w_px"]) + params["b_px"]
    ly = jnp.einsum('bc,ckw->bkw', pooled, params["w_py"]) + params["b_py"]
    # FusionA
    xi = jnp.argmax(lx, axis=-1).astype(jnp.float32)
    yi = jnp.argmax(ly, axis=-1).astype(jnp.float32)
    xy = jnp.stack([xi, yi], axis=-1).reshape(bt, 2 * K)          # 'b k xy -> b (k xy)'
    mean = jnp.mean(xy, axis=-1, keepdims=True)
    var = jnp.mean((xy - mean) ** 2, axis=-1, keepdims=True)
    xyn = (xy - mean) / jnp.sqrt(var + 1e-5) * params["ln_g"] + params["ln_b"]
    kp = (xyn @ params["w_kp1"] + params["b_kp1"]) @ params["w_kp2"] + params["b_kp2"]
    gp = xyn @ params["w_gp"] + params["b_gp"]
    gate = jax.nn.sigmoid(jnp.concatenate([gp, feats1], axis=-1) @ params["w_ge"] + params["b_ge"])
    feats = gate[:, C:] * feats1 + gate[:, :C] * kp
    return jnp.transpose(feats.reshape(b, T, C), (0, 2, 1))       # '(b t) c -> b c t'


if __name__ == "__main__":
    key = jax.random.PRNGKey(0)
    k_x, k_p = jax.random.split(key)

    b, c, T, H, W = 2, 3, 8, 16, 16
    num_keypoints, feats_dim, hidden_dim = 8, 32, 16
    simcc_x, simcc_y = 48, 64

    x = jax.random.normal(k_x, (b, c, T, H, W), jnp.float32)
    t_length = jnp.array([T, T - 2], jnp.int32)

    params = init_params(
        k_p, c_in=c, img_h=H, img_w=W, num_keypoints=num_keypoints,
        feats_dim=feats_dim, hidden_dim=hidden_dim,
        simcc_x=simcc_x, simcc_y=simcc_y,
    )

    # sanity: the resize+mean algebraic fold must match jax.image.resize exactly (fp noise)
    frame0 = x[0, 0, 0]
    folded = jnp.sum(frame0 * params["w_resize"])
    direct = jnp.mean(jax.image.resize(frame0, params["resize_hw"], method="bilinear"))
    assert jnp.allclose(folded, direct, rtol=1e-4, atol=1e-4), (folded, direct)

    fwd = jax.jit(lambda xx, tl: dual_task_stream_encoder(xx, tl, params))
    result = fwd(x, t_length)
    jax.block_until_ready(result.out)

    assert result.out.shape == (b, feats_dim, T), result.out.shape
    assert result.t_length.shape == (b,)
    assert bool(jnp.all(jnp.isfinite(result.out)))

    # end-to-end check against a pure-JAX reference of the same forward pass
    ref = reference_forward(x, params)
    max_diff = float(jnp.max(jnp.abs(result.out - ref)))
    assert jnp.allclose(result.out, ref, rtol=2e-3, atol=2e-3), max_diff

    print("KERNEL_OK")
</pallas_src>

<mosaic_0001>
module attributes {stable_mosaic.version = 11 : i64} {
  func.func @kernel(%arg0: i32, %arg1: i32, %arg2: memref<1x3x8x256xf32, #tpu.memory_space<vmem>>, %arg3: memref<1x256xf32, #tpu.memory_space<vmem>>, %arg4: memref<3x32xf32, #tpu.memory_space<vmem>>, %arg5: memref<1x32xf32, #tpu.memory_space<vmem>>, %arg6: memref<3x8x48xf32, #tpu.memory_space<vmem>>, %arg7: memref<8x48xf32, #tpu.memory_space<vmem>>, %arg8: memref<3x8x64xf32, #tpu.memory_space<vmem>>, %arg9: memref<8x64xf32, #tpu.memory_space<vmem>>, %arg10: memref<4x8xf32, #tpu.memory_space<vmem>>, %arg11: memref<8x48xf32, #tpu.memory_space<vmem>>, %arg12: memref<8x48xf32, #tpu.memory_space<vmem>>, %arg13: memref<1x48xf32, #tpu.memory_space<vmem>>, %arg14: memref<16x32xf32, #tpu.memory_space<vmem>>, %arg15: memref<1x32xf32, #tpu.memory_space<vmem>>, %arg16: memref<32x64xf32, #tpu.memory_space<vmem>>, %arg17: memref<32x64xf32, #tpu.memory_space<vmem>>, %arg18: memref<1x64xf32, #tpu.memory_space<vmem>>, %arg19: memref<1x8x32xf32, #tpu.memory_space<vmem>>) attributes {dimension_semantics = [#tpu.dimension_semantics<parallel>, #tpu.dimension_semantics<parallel>], iteration_bounds = array<i64: 2, 1>, scalar_prefetch = 0 : i64, scratch_operands = 0 : i64, tpu.core_type = #tpu.core_type<tc>, window_params = [{transform_indices = @transform_0, window_bounds = array<i64: 1, 3, 8, 256>}, {pipeline_mode = #tpu.pipeline_mode<synchronous>, transform_indices = @transform_1, window_bounds = array<i64: 1, 256>}, {pipeline_mode = #tpu.pipeline_mode<synchronous>, transform_indices = @transform_2, window_bounds = array<i64: 3, 32>}, {pipeline_mode = #tpu.pipeline_mode<synchronous>, transform_indices = @transform_3, window_bounds = array<i64: 1, 32>}, {pipeline_mode = #tpu.pipeline_mode<synchronous>, transform_indices = @transform_4, window_bounds = array<i64: 3, 8, 48>}, {pipeline_mode = #tpu.pipeline_mode<synchronous>, transform_indices = @transform_5, window_bounds = array<i64: 8, 48>}, {pipeline_mode = #tpu.pipeline_mode<synchronous>, transform_indices = @transform_6, window_bounds = array<i64: 3, 8, 64>}, {pipeline_mode = #tpu.pipeline_mode<synchronous>, transform_indices = @transform_7, window_bounds = array<i64: 8, 64>}, {pipeline_mode = #tpu.pipeline_mode<synchronous>, transform_indices = @transform_8, window_bounds = array<i64: 4, 8>}, {pipeline_mode = #tpu.pipeline_mode<synchronous>, transform_indices = @transform_9, window_bounds = array<i64: 8, 48>}, {pipeline_mode = #tpu.pipeline_mode<synchronous>, transform_indices = @transform_10, window_bounds = array<i64: 8, 48>}, {pipeline_mode = #tpu.pipeline_mode<synchronous>, transform_indices = @transform_11, window_bounds = array<i64: 1, 48>}, {pipeline_mode = #tpu.pipeline_mode<synchronous>, transform_indices = @transform_12, window_bounds = array<i64: 16, 32>}, {pipeline_mode = #tpu.pipeline_mode<synchronous>, transform_indices = @transform_13, window_bounds = array<i64: 1, 32>}, {pipeline_mode = #tpu.pipeline_mode<synchronous>, transform_indices = @transform_14, window_bounds = array<i64: 32, 64>}, {pipeline_mode = #tpu.pipeline_mode<synchronous>, transform_indices = @transform_15, window_bounds = array<i64: 32, 64>}, {pipeline_mode = #tpu.pipeline_mode<synchronous>, transform_indices = @transform_16, window_bounds = array<i64: 1, 64>}, {transform_indices = @transform_17, window_bounds = array<i64: 1, 8, 32>}]} {
    %c0 = arith.constant 0 : index
    %c0_0 = arith.constant 0 : index
    %0 = vector.load %arg3[%c0, %c0_0] : memref<1x256xf32, #tpu.memory_space<vmem>>, vector<1x256xf32>
    %c0_1 = arith.constant 0 : index
    %c0_2 = arith.constant 0 : index
    %c0_3 = arith.constant 0 : index
    %c0_4 = arith.constant 0 : index
    %1 = vector.load %arg2[%c0_1, %c0_2, %c0_3, %c0_4] : memref<1x3x8x256xf32, #tpu.memory_space<vmem>>, vector<1x1x8x256xf32>
    %2 = vector.shape_cast %1 : vector<1x1x8x256xf32> to vector<8x256xf32>
    %cst = arith.constant dense<0.000000e+00> : vector<8xf32>
    %3 = vector.multi_reduction <add>, %2, %cst [1] : vector<8x256xf32> to vector<8xf32>
    %4 = vector.shape_cast %3 : vector<8xf32> to vector<8x1xf32>
    %cst_5 = arith.constant 3.906250e-03 : f32
    %5 = vector.broadcast %cst_5 : f32 to vector<8x1xf32>
    %6 = arith.mulf %4, %5 : vector<8x1xf32>
    %7 = vector.broadcast %0 : vector<1x256xf32> to vector<8x256xf32>
    %8 = arith.mulf %2, %7 : vector<8x256xf32>
    %cst_6 = arith.constant dense<0.000000e+00> : vector<8xf32>
    %9 = vector.multi_reduction <add>, %8, %cst_6 [1] : vector<8x256xf32> to vector<8xf32>
    %10 = vector.shape_cast %9 : vector<8xf32> to vector<8x1xf32>
    %c0_7 = arith.constant 0 : index
    %c0_8 = arith.constant 0 : index
    %11 = vector.load %arg4[%c0_7, %c0_8] : memref<3x32xf32, #tpu.memory_space<vmem>>, vector<1x32xf32>
    %12 = vector.broadcast %6 : vector<8x1xf32> to vector<8x32xf32>
    %13 = vector.broadcast %11 : vector<1x32xf32> to vector<8x32xf32>
    %14 = arith.mulf %12, %13 : vector<8x32xf32>
    %15 = vector.shape_cast %10 : vector<8x1xf32> to vector<8x1x1xf32>
    %c0_9 = arith.constant 0 : index
    %c0_10 = arith.constant 0 : index
    %c0_11 = arith.constant 0 : index
    %16 = vector.load %arg6[%c0_9, %c0_10, %c0_11] : memref<3x8x48xf32, #tpu.memory_space<vmem>>, vector<1x8x48xf32>
    %17 = vector.shape_cast %16 : vector<1x8x48xf32> to vector<8x48xf32>
    %18 = vector.shape_cast %17 : vector<8x48xf32> to vector<1x8x48xf32>
    %19 = vector.broadcast %15 : vector<8x1x1xf32> to vector<8x8x48xf32>
    %20 = vector.broadcast %18 : vector<1x8x48xf32> to vector<8x8x48xf32>
    %21 = arith.mulf %19, %20 : vector<8x8x48xf32>
    %22 = vector.shape_cast %10 : vector<8x1xf32> to vector<8x1x1xf32>
    %c0_12 = arith.constant 0 : index
    %c0_13 = arith.constant 0 : index
    %c0_14 = arith.constant 0 : index
    %23 = vector.load %arg8[%c0_12, %c0_13, %c0_14] : memref<3x8x64xf32, #tpu.memory_space<vmem>>, vector<1x8x64xf32>
    %24 = vector.shape_cast %23 : vector<1x8x64xf32> to vector<8x64xf32>
    %25 = vector.shape_cast %24 : vector<8x64xf32> to vector<1x8x64xf32>
    %26 = vector.broadcast %22 : vector<8x1x1xf32> to vector<8x8x64xf32>
    %27 = vector.broadcast %25 : vector<1x8x64xf32> to vector<8x8x64xf32>
    %28 = arith.mulf %26, %27 : vector<8x8x64xf32>
    %c0_15 = arith.constant 0 : index
    %c1 = arith.constant 1 : index
    %c0_16 = arith.constant 0 : index
    %c0_17 = arith.constant 0 : index
    %29 = vector.load %arg2[%c0_15, %c1, %c0_16, %c0_17] : memref<1x3x8x256xf32, #tpu.memory_space<vmem>>, vector<1x1x8x256xf32>
    %30 = vector.shape_cast %29 : vector<1x1x8x256xf32> to vector<8x256xf32>
    %cst_18 = arith.constant dense<0.000000e+00> : vector<8xf32>
    %31 = vector.multi_reduction <add>, %30, %cst_18 [1] : vector<8x256xf32> to vector<8xf32>
    %32 = vector.shape_cast %31 : vector<8xf32> to vector<8x1xf32>
    %cst_19 = arith.constant 3.906250e-03 : f32
    %33 = vector.broadcast %cst_19 : f32 to vector<8x1xf32>
    %34 = arith.mulf %32, %33 : vector<8x1xf32>
    %35 = vector.broadcast %0 : vector<1x256xf32> to vector<8x256xf32>
    %36 = arith.mulf %30, %35 : vector<8x256xf32>
    %cst_20 = arith.constant dense<0.000000e+00> : vector<8xf32>
    %37 = vector.multi_reduction <add>, %36, %cst_20 [1] : vector<8x256xf32> to vector<8xf32>
    %38 = vector.shape_cast %37 : vector<8xf32> to vector<8x1xf32>
    %c1_21 = arith.constant 1 : index
    %c0_22 = arith.constant 0 : index
    %39 = vector.load %arg4[%c1_21, %c0_22] : memref<3x32xf32, #tpu.memory_space<vmem>>, vector<1x32xf32>
    %40 = vector.broadcast %34 : vector<8x1xf32> to vector<8x32xf32>
    %41 = vector.broadcast %39 : vector<1x32xf32> to vector<8x32xf32>
    %42 = arith.mulf %40, %41 : vector<8x32xf32>
    %43 = vector.shape_cast %38 : vector<8x1xf32> to vector<8x1x1xf32>
    %c1_23 = arith.constant 1 : index
    %c0_24 = arith.constant 0 : index
    %c0_25 = arith.constant 0 : index
    %44 = vector.load %arg6[%c1_23, %c0_24, %c0_25] : memref<3x8x48xf32, #tpu.memory_space<vmem>>, vector<1x8x48xf32>
    %45 = vector.shape_cast %44 : vector<1x8x48xf32> to vector<8x48xf32>
    %46 = vector.shape_cast %45 : vector<8x48xf32> to vector<1x8x48xf32>
    %47 = vector.broadcast %43 : vector<8x1x1xf32> to vector<8x8x48xf32>
    %48 = vector.broadcast %46 : vector<1x8x48xf32> to vector<8x8x48xf32>
    %49 = arith.mulf %47, %48 : vector<8x8x48xf32>
    %50 = vector.shape_cast %38 : vector<8x1xf32> to vector<8x1x1xf32>
    %c1_26 = arith.constant 1 : index
    %c0_27 = arith.constant 0 : index
    %c0_28 = arith.constant 0 : index
    %51 = vector.load %arg8[%c1_26, %c0_27, %c0_28] : memref<3x8x64xf32, #tpu.memory_space<vmem>>, vector<1x8x64xf32>
    %52 = vector.shape_cast %51 : vector<1x8x64xf32> to vector<8x64xf32>
    %53 = vector.shape_cast %52 : vector<8x64xf32> to vector<1x8x64xf32>
    %54 = vector.broadcast %50 : vector<8x1x1xf32> to vector<8x8x64xf32>
    %55 = vector.broadcast %53 : vector<1x8x64xf32> to vector<8x8x64xf32>
    %56 = arith.mulf %54, %55 : vector<8x8x64xf32>
    %57 = arith.addf %14, %42 : vector<8x32xf32>
    %58 = arith.addf %21, %49 : vector<8x8x48xf32>
    %59 = arith.addf %28, %56 : vector<8x8x64xf32>
    %c0_29 = arith.constant 0 : index
    %c2 = arith.constant 2 : index
    %c0_30 = arith.constant 0 : index
    %c0_31 = arith.constant 0 : index
    %60 = vector.load %arg2[%c0_29, %c2, %c0_30, %c0_31] : memref<1x3x8x256xf32, #tpu.memory_space<vmem>>, vector<1x1x8x256xf32>
    %61 = vector.shape_cast %60 : vector<1x1x8x256xf32> to vector<8x256xf32>
    %cst_32 = arith.constant dense<0.000000e+00> : vector<8xf32>
    %62 = vector.multi_reduction <add>, %61, %cst_32 [1] : vector<8x256xf32> to vector<8xf32>
    %63 = vector.shape_cast %62 : vector<8xf32> to vector<8x1xf32>
    %cst_33 = arith.constant 3.906250e-03 : f32
    %64 = vector.broadcast %cst_33 : f32 to vector<8x1xf32>
    %65 = arith.mulf %63, %64 : vector<8x1xf32>
    %66 = vector.broadcast %0 : vector<1x256xf32> to vector<8x256xf32>
    %67 = arith.mulf %61, %66 : vector<8x256xf32>
    %cst_34 = arith.constant dense<0.000000e+00> : vector<8xf32>
    %68 = vector.multi_reduction <add>, %67, %cst_34 [1] : vector<8x256xf32> to vector<8xf32>
    %69 = vector.shape_cast %68 : vector<8xf32> to vector<8x1xf32>
    %c2_35 = arith.constant 2 : index
    %c0_36 = arith.constant 0 : index
    %70 = vector.load %arg4[%c2_35, %c0_36] : memref<3x32xf32, #tpu.memory_space<vmem>>, vector<1x32xf32>
    %71 = vector.broadcast %65 : vector<8x1xf32> to vector<8x32xf32>
    %72 = vector.broadcast %70 : vector<1x32xf32> to vector<8x32xf32>
    %73 = arith.mulf %71, %72 : vector<8x32xf32>
    %74 = vector.shape_cast %69 : vector<8x1xf32> to vector<8x1x1xf32>
    %c2_37 = arith.constant 2 : index
    %c0_38 = arith.constant 0 : index
    %c0_39 = arith.constant 0 : index
    %75 = vector.load %arg6[%c2_37, %c0_38, %c0_39] : memref<3x8x48xf32, #tpu.memory_space<vmem>>, vector<1x8x48xf32>
    %76 = vector.shape_cast %75 : vector<1x8x48xf32> to vector<8x48xf32>
    %77 = vector.shape_cast %76 : vector<8x48xf32> to vector<1x8x48xf32>
    %78 = vector.broadcast %74 : vector<8x1x1xf32> to vector<8x8x48xf32>
    %79 = vector.broadcast %77 : vector<1x8x48xf32> to vector<8x8x48xf32>
    %80 = arith.mulf %78, %79 : vector<8x8x48xf32>
    %81 = vector.shape_cast %69 : vector<8x1xf32> to vector<8x1x1xf32>
    %c2_40 = arith.constant 2 : index
    %c0_41 = arith.constant 0 : index
    %c0_42 = arith.constant 0 : index
    %82 = vector.load %arg8[%c2_40, %c0_41, %c0_42] : memref<3x8x64xf32, #tpu.memory_space<vmem>>, vector<1x8x64xf32>
    %83 = vector.shape_cast %82 : vector<1x8x64xf32> to vector<8x64xf32>
    %84 = vector.shape_cast %83 : vector<8x64xf32> to vector<1x8x64xf32>
    %85 = vector.broadcast %81 : vector<8x1x1xf32> to vector<8x8x64xf32>
    %86 = vector.broadcast %84 : vector<1x8x64xf32> to vector<8x8x64xf32>
    %87 = arith.mulf %85, %86 : vector<8x8x64xf32>
    %88 = arith.addf %57, %73 : vector<8x32xf32>
    %89 = arith.addf %58, %80 : vector<8x8x48xf32>
    %90 = arith.addf %59, %87 : vector<8x8x64xf32>
    %c0_43 = arith.constant 0 : index
    %c0_44 = arith.constant 0 : index
    %91 = vector.load %arg5[%c0_43, %c0_44] : memref<1x32xf32, #tpu.memory_space<vmem>>, vector<1x32xf32>
    %92 = vector.broadcast %91 : vector<1x32xf32> to vector<8x32xf32>
    %93 = arith.addf %88, %92 : vector<8x32xf32>
    %c0_45 = arith.constant 0 : index
    %c0_46 = arith.constant 0 : index
    %94 = vector.load %arg7[%c0_45, %c0_46] : memref<8x48xf32, #tpu.memory_space<vmem>>, vector<8x48xf32>
    %95 = vector.shape_cast %94 : vector<8x48xf32> to vector<1x8x48xf32>
    %96 = vector.broadcast %95 : vector<1x8x48xf32> to vector<8x8x48xf32>
    %97 = arith.addf %89, %96 : vector<8x8x48xf32>
    %c0_47 = arith.constant 0 : index
    %c0_48 = arith.constant 0 : index
    %98 = vector.load %arg9[%c0_47, %c0_48] : memref<8x64xf32, #tpu.memory_space<vmem>>, vector<8x64xf32>
    %99 = vector.shape_cast %98 : vector<8x64xf32> to vector<1x8x64xf32>
    %100 = vector.broadcast %99 : vector<1x8x64xf32> to vector<8x8x64xf32>
    %101 = arith.addf %90, %100 : vector<8x8x64xf32>
    %102 = tpu.iota {dimensions = array<i32: 2>} : vector<8x8x48xi32>
    %cst_49 = arith.constant dense<0xFF800000> : vector<8x8xf32>
    %103 = vector.multi_reduction <maximumf>, %97, %cst_49 [2] : vector<8x8x48xf32> to vector<8x8xf32>
    %104 = vector.shape_cast %103 : vector<8x8xf32> to vector<8x8x1xf32>
    %105 = vector.broadcast %104 : vector<8x8x1xf32> to vector<8x8x48xf32>
    %106 = arith.cmpf oeq, %97, %105 : vector<8x8x48xf32>
    %c48_i32 = arith.constant 48 : i32
    %107 = vector.broadcast %c48_i32 : i32 to vector<8x8x48xi32>
    %108 = arith.select %106, %102, %107 : vector<8x8x48xi1>, vector<8x8x48xi32>
    %cst_50 = arith.constant dense<2147483647> : vector<8x8xi32>
    %109 = vector.multi_reduction <minsi>, %108, %cst_50 [2] : vector<8x8x48xi32> to vector<8x8xi32>
    %110 = arith.sitofp %109 : vector<8x8xi32> to vector<8x8xf32>
    %111 = tpu.iota {dimensions = array<i32: 2>} : vector<8x8x64xi32>
    %cst_51 = arith.constant dense<0xFF800000> : vector<8x8xf32>
    %112 = vector.multi_reduction <maximumf>, %101, %cst_51 [2] : vector<8x8x64xf32> to vector<8x8xf32>
    %113 = vector.shape_cast %112 : vector<8x8xf32> to vector<8x8x1xf32>
    %114 = vector.broadcast %113 : vector<8x8x1xf32> to vector<8x8x64xf32>
    %115 = arith.cmpf oeq, %101, %114 : vector<8x8x64xf32>
    %c64_i32 = arith.constant 64 : i32
    %116 = vector.broadcast %c64_i32 : i32 to vector<8x8x64xi32>
    %117 = arith.select %115, %111, %116 : vector<8x8x64xi1>, vector<8x8x64xi32>
    %cst_52 = arith.constant dense<2147483647> : vector<8x8xi32>
    %118 = vector.multi_reduction <minsi>, %117, %cst_52 [2] : vector<8x8x64xi32> to vector<8x8xi32>
    %119 = arith.sitofp %118 : vector<8x8xi32> to vector<8x8xf32>
    %c0_53 = arith.constant 0 : index
    %c0_54 = arith.constant 0 : index
    %120 = vector.load %arg10[%c0_53, %c0_54] : memref<4x8xf32, #tpu.memory_space<vmem>>, vector<4x8xf32>
    %cst_55 = arith.constant dense<0.000000e+00> : vector<8xf32>
    %121 = vector.multi_reduction <add>, %110, %cst_55 [1] : vector<8x8xf32> to vector<8xf32>
    %122 = vector.shape_cast %121 : vector<8xf32> to vector<8x1xf32>
    %cst_56 = arith.constant dense<0.000000e+00> : vector<8xf32>
    %123 = vector.multi_reduction <add>, %119, %cst_56 [1] : vector<8x8xf32> to vector<8xf32>
    %124 = vector.shape_cast %123 : vector<8xf32> to vector<8x1xf32>
    %125 = arith.addf %122, %124 : vector<8x1xf32>
    %cst_57 = arith.constant 1.600000e+01 : f32
    %126 = vector.broadcast %cst_57 : f32 to vector<8x1xf32>
    %127 = arith.divf %125, %126 : vector<8x1xf32>
    %128 = vector.broadcast %127 : vector<8x1xf32> to vector<8x8xf32>
    %129 = arith.subf %110, %128 : vector<8x8xf32>
    %130 = arith.mulf %129, %129 : vector<8x8xf32>
    %cst_58 = arith.constant dense<0.000000e+00> : vector<8xf32>
    %131 = vector.multi_reduction <add>, %130, %cst_58 [1] : vector<8x8xf32> to vector<8xf32>
    %132 = vector.shape_cast %131 : vector<8xf32> to vector<8x1xf32>
    %133 = vector.broadcast %127 : vector<8x1xf32> to vector<8x8xf32>
    %134 = arith.subf %119, %133 : vector<8x8xf32>
    %135 = arith.mulf %134, %134 : vector<8x8xf32>
    %cst_59 = arith.constant dense<0.000000e+00> : vector<8xf32>
    %136 = vector.multi_reduction <add>, %135, %cst_59 [1] : vector<8x8xf32> to vector<8xf32>
    %137 = vector.shape_cast %136 : vector<8xf32> to vector<8x1xf32>
    %138 = arith.addf %132, %137 : vector<8x1xf32>
    %cst_60 = arith.constant 1.600000e+01 : f32
    %139 = vector.broadcast %cst_60 : f32 to vector<8x1xf32>
    %140 = arith.divf %138, %139 : vector<8x1xf32>
    %cst_61 = arith.constant 9.99999974E-6 : f32
    %141 = vector.broadcast %cst_61 : f32 to vector<8x1xf32>
    %142 = arith.addf %140, %141 : vector<8x1xf32>
    %143 = math.rsqrt %142 : vector<8x1xf32>
    %144 = vector.broadcast %127 : vector<8x1xf32> to vector<8x8xf32>
    %145 = arith.subf %110, %144 : vector<8x8xf32>
    %146 = vector.broadcast %143 : vector<8x1xf32> to vector<8x8xf32>
    %147 = arith.mulf %145, %146 : vector<8x8xf32>
    %148 = vector.extract_strided_slice %120 {offsets = [0, 0], sizes = [1, 8], strides = [1, 1]} : vector<4x8xf32> to vector<1x8xf32>
    %149 = vector.broadcast %148 : vector<1x8xf32> to vector<8x8xf32>
    %150 = arith.mulf %147, %149 : vector<8x8xf32>
    %151 = vector.extract_strided_slice %120 {offsets = [2, 0], sizes = [1, 8], strides = [1, 1]} : vector<4x8xf32> to vector<1x8xf32>
    %152 = vector.broadcast %151 : vector<1x8xf32> to vector<8x8xf32>
    %153 = arith.addf %150, %152 : vector<8x8xf32>
    %154 = vector.broadcast %127 : vector<8x1xf32> to vector<8x8xf32>
    %155 = arith.subf %119, %154 : vector<8x8xf32>
    %156 = vector.broadcast %143 : vector<8x1xf32> to vector<8x8xf32>
    %157 = arith.mulf %155, %156 : vector<8x8xf32>
    %158 = vector.extract_strided_slice %120 {offsets = [1, 0], sizes = [1, 8], strides = [1, 1]} : vector<4x8xf32> to vector<1x8xf32>
    %159 = vector.broadcast %158 : vector<1x8xf32> to vector<8x8xf32>
    %160 = arith.mulf %157, %159 : vector<8x8xf32>
    %161 = vector.extract_strided_slice %120 {offsets = [3, 0], sizes = [1, 8], strides = [1, 1]} : vector<4x8xf32> to vector<1x8xf32>
    %162 = vector.broadcast %161 : vector<1x8xf32> to vector<8x8xf32>
    %163 = arith.addf %160, %162 : vector<8x8xf32>
    %c0_62 = arith.constant 0 : index
    %c0_63 = arith.constant 0 : index
    %164 = vector.load %arg11[%c0_62, %c0_63] : memref<8x48xf32, #tpu.memory_space<vmem>>, vector<8x48xf32>
    %cst_64 = arith.constant dense<0.000000e+00> : vector<8x48xf32>
    %165 = tpu.matmul %153, %164, %cst_64 {dimension_numbers = #tpu.dot_dimension_numbers<[1], [0], [0], [1], [0, 0, 1, 1], [], []>} : vector<8x8xf32>, vector<8x48xf32>, vector<8x48xf32> -> vector<8x48xf32>
    %c0_65 = arith.constant 0 : index
    %c0_66 = arith.constant 0 : index
    %166 = vector.load %arg12[%c0_65, %c0_66] : memref<8x48xf32, #tpu.memory_space<vmem>>, vector<8x48xf32>
    %cst_67 = arith.constant dense<0.000000e+00> : vector<8x48xf32>
    %167 = tpu.matmul %163, %166, %cst_67 {dimension_numbers = #tpu.dot_dimension_numbers<[1], [0], [0], [1], [0, 0, 1, 1], [], []>} : vector<8x8xf32>, vector<8x48xf32>, vector<8x48xf32> -> vector<8x48xf32>
    %168 = arith.addf %165, %167 : vector<8x48xf32>
    %c0_68 = arith.constant 0 : index
    %c0_69 = arith.constant 0 : index
    %169 = vector.load %arg13[%c0_68, %c0_69] : memref<1x48xf32, #tpu.memory_space<vmem>>, vector<1x48xf32>
    %170 = vector.broadcast %169 : vector<1x48xf32> to vector<8x48xf32>
    %171 = arith.addf %168, %170 : vector<8x48xf32>
    %172 = vector.extract_strided_slice %171 {offsets = [0, 0], sizes = [8, 16], strides = [1, 1]} : vector<8x48xf32> to vector<8x16xf32>
    %173 = vector.extract_strided_slice %171 {offsets = [0, 16], sizes = [8, 32], strides = [1, 1]} : vector<8x48xf32> to vector<8x32xf32>
    %c0_70 = arith.constant 0 : index
    %c0_71 = arith.constant 0 : index
    %174 = vector.load %arg14[%c0_70, %c0_71] : memref<16x32xf32, #tpu.memory_space<vmem>>, vector<16x32xf32>
    %cst_72 = arith.constant dense<0.000000e+00> : vector<8x32xf32>
    %175 = tpu.matmul %172, %174, %cst_72 {dimension_numbers = #tpu.dot_dimension_numbers<[1], [0], [0], [1], [0, 0, 1, 1], [], []>} : vector<8x16xf32>, vector<16x32xf32>, vector<8x32xf32> -> vector<8x32xf32>
    %c0_73 = arith.constant 0 : index
    %c0_74 = arith.constant 0 : index
    %176 = vector.load %arg15[%c0_73, %c0_74] : memref<1x32xf32, #tpu.memory_space<vmem>>, vector<1x32xf32>
    %177 = vector.broadcast %176 : vector<1x32xf32> to vector<8x32xf32>
    %178 = arith.addf %175, %177 : vector<8x32xf32>
    %c0_75 = arith.constant 0 : index
    %c0_76 = arith.constant 0 : index
    %179 = vector.load %arg16[%c0_75, %c0_76] : memref<32x64xf32, #tpu.memory_space<vmem>>, vector<32x64xf32>
    %cst_77 = arith.constant dense<0.000000e+00> : vector<8x64xf32>
    %180 = tpu.matmul %173, %179, %cst_77 {dimension_numbers = #tpu.dot_dimension_numbers<[1], [0], [0], [1], [0, 0, 1, 1], [], []>} : vector<8x32xf32>, vector<32x64xf32>, vector<8x64xf32> -> vector<8x64xf32>
    %c0_78 = arith.constant 0 : index
    %c0_79 = arith.constant 0 : index
    %181 = vector.load %arg17[%c0_78, %c0_79] : memref<32x64xf32, #tpu.memory_space<vmem>>, vector<32x64xf32>
    %cst_80 = arith.constant dense<0.000000e+00> : vector<8x64xf32>
    %182 = tpu.matmul %93, %181, %cst_80 {dimension_numbers = #tpu.dot_dimension_numbers<[1], [0], [0], [1], [0, 0, 1, 1], [], []>} : vector<8x32xf32>, vector<32x64xf32>, vector<8x64xf32> -> vector<8x64xf32>
    %183 = arith.addf %180, %182 : vector<8x64xf32>
    %c0_81 = arith.constant 0 : index
    %c0_82 = arith.constant 0 : index
    %184 = vector.load %arg18[%c0_81, %c0_82] : memref<1x64xf32, #tpu.memory_space<vmem>>, vector<1x64xf32>
    %185 = vector.broadcast %184 : vector<1x64xf32> to vector<8x64xf32>
    %186 = arith.addf %183, %185 : vector<8x64xf32>
    %187 = arith.negf %186 : vector<8x64xf32>
    %188 = math.exp %187 : vector<8x64xf32>
    %cst_83 = arith.constant 1.000000e+00 : f32
    %189 = vector.broadcast %cst_83 : f32 to vector<8x64xf32>
    %190 = arith.addf %189, %188 : vector<8x64xf32>
    %191 = arith.divf %189, %190 : vector<8x64xf32>
    %192 = vector.extract_strided_slice %191 {offsets = [0, 0], sizes = [8, 32], strides = [1, 1]} : vector<8x64xf32> to vector<8x32xf32>
    %193 = vector.extract_strided_slice %191 {offsets = [0, 32], sizes = [8, 32], strides = [1, 1]} : vector<8x64xf32> to vector<8x32xf32>
    %194 = arith.mulf %193, %93 : vector<8x32xf32>
    %195 = arith.mulf %192, %178 : vector<8x32xf32>
    %196 = arith.addf %194, %195 : vector<8x32xf32>
    %c0_84 = arith.constant 0 : index
    %c0_85 = arith.constant 0 : index
    %c0_86 = arith.constant 0 : index
    %197 = vector.load %arg19[%c0_84, %c0_85, %c0_86] : memref<1x8x32xf32, #tpu.memory_space<vmem>>, vector<1x8x32xf32>
    %198 = vector.shape_cast %197 : vector<1x8x32xf32> to vector<8x32xf32>
    %199 = vector.shape_cast %196 : vector<8x32xf32> to vector<1x8x32xf32>
    tpu.vector_store %arg19[%c0_84, %c0_85, %c0_86], %199 {strides = array<i32>} : memref<1x8x32xf32, #tpu.memory_space<vmem>>, vector<1x8x32xf32>,
    return
  }
  func.func @transform_0(%arg0: i32, %arg1: i32) -> (i32, i32, i32, i32) {
    %c0_i32 = arith.constant 0 : i32
    %c0_i32_0 = arith.constant 0 : i32
    %c0_i32_1 = arith.constant 0 : i32
    return %arg0, %c0_i32, %arg1, %c0_i32_0 : i32, i32, i32, i32
  }
  func.func @transform_1(%arg0: i32, %arg1: i32) -> (i32, i32) {
    %c0_i32 = arith.constant 0 : i32
    %c0_i32_0 = arith.constant 0 : i32
    %c0_i32_1 = arith.constant 0 : i32
    return %c0_i32, %c0_i32_0 : i32, i32
  }
  func.func @transform_2(%arg0: i32, %arg1: i32) -> (i32, i32) {
    %c0_i32 = arith.constant 0 : i32
    %c0_i32_0 = arith.constant 0 : i32
    %c0_i32_1 = arith.constant 0 : i32
    return %c0_i32, %c0_i32_0 : i32, i32
  }
  func.func @transform_3(%arg0: i32, %arg1: i32) -> (i32, i32) {
    %c0_i32 = arith.constant 0 : i32
    %c0_i32_0 = arith.constant 0 : i32
    %c0_i32_1 = arith.constant 0 : i32
    return %c0_i32, %c0_i32_0 : i32, i32
  }
  func.func @transform_4(%arg0: i32, %arg1: i32) -> (i32, i32, i32) {
    %c0_i32 = arith.constant 0 : i32
    %c0_i32_0 = arith.constant 0 : i32
    %c0_i32_1 = arith.constant 0 : i32
    %c0_i32_2 = arith.constant 0 : i32
    return %c0_i32, %c0_i32_0, %c0_i32_1 : i32, i32, i32
  }
  func.func @transform_5(%arg0: i32, %arg1: i32) -> (i32, i32) {
    %c0_i32 = arith.constant 0 : i32
    %c0_i32_0 = arith.constant 0 : i32
    %c0_i32_1 = arith.constant 0 : i32
    return %c0_i32, %c0_i32_0 : i32, i32
  }
  func.func @transform_6(%arg0: i32, %arg1: i32) -> (i32, i32, i32) {
    %c0_i32 = arith.constant 0 : i32
    %c0_i32_0 = arith.constant 0 : i32
    %c0_i32_1 = arith.constant 0 : i32
    %c0_i32_2 = arith.constant 0 : i32
    return %c0_i32, %c0_i32_0, %c0_i32_1 : i32, i32, i32
  }
  func.func @transform_7(%arg0: i32, %arg1: i32) -> (i32, i32) {
    %c0_i32 = arith.constant 0 : i32
    %c0_i32_0 = arith.constant 0 : i32
    %c0_i32_1 = arith.constant 0 : i32
    return %c0_i32, %c0_i32_0 : i32, i32
  }
  func.func @transform_8(%arg0: i32, %arg1: i32) -> (i32, i32) {
    %c0_i32 = arith.constant 0 : i32
    %c0_i32_0 = arith.constant 0 : i32
    %c0_i32_1 = arith.constant 0 : i32
    return %c0_i32, %c0_i32_0 : i32, i32
  }
  func.func @transform_9(%arg0: i32, %arg1: i32) -> (i32, i32) {
    %c0_i32 = arith.constant 0 : i32
    %c0_i32_0 = arith.constant 0 : i32
    %c0_i32_1 = arith.constant 0 : i32
    return %c0_i32, %c0_i32_0 : i32, i32
  }
  func.func @transform_10(%arg0: i32, %arg1: i32) -> (i32, i32) {
    %c0_i32 = arith.constant 0 : i32
    %c0_i32_0 = arith.constant 0 : i32
    %c0_i32_1 = arith.constant 0 : i32
    return %c0_i32, %c0_i32_0 : i32, i32
  }
  func.func @transform_11(%arg0: i32, %arg1: i32) -> (i32, i32) {
    %c0_i32 = arith.constant 0 : i32
    %c0_i32_0 = arith.constant 0 : i32
    %c0_i32_1 = arith.constant 0 : i32
    return %c0_i32, %c0_i32_0 : i32, i32
  }
  func.func @transform_12(%arg0: i32, %arg1: i32) -> (i32, i32) {
    %c0_i32 = arith.constant 0 : i32
    %c0_i32_0 = arith.constant 0 : i32
    %c0_i32_1 = arith.constant 0 : i32
    return %c0_i32, %c0_i32_0 : i32, i32
  }
  func.func @transform_13(%arg0: i32, %arg1: i32) -> (i32, i32) {
    %c0_i32 = arith.constant 0 : i32
    %c0_i32_0 = arith.constant 0 : i32
    %c0_i32_1 = arith.constant 0 : i32
    return %c0_i32, %c0_i32_0 : i32, i32
  }
  func.func @transform_14(%arg0: i32, %arg1: i32) -> (i32, i32) {
    %c0_i32 = arith.constant 0 : i32
    %c0_i32_0 = arith.constant 0 : i32
    %c0_i32_1 = arith.constant 0 : i32
    return %c0_i32, %c0_i32_0 : i32, i32
  }
  func.func @transform_15(%arg0: i32, %arg1: i32) -> (i32, i32) {
    %c0_i32 = arith.constant 0 : i32
    %c0_i32_0 = arith.constant 0 : i32
    %c0_i32_1 = arith.constant 0 : i32
    return %c0_i32, %c0_i32_0 : i32, i32
  }
  func.func @transform_16(%arg0: i32, %arg1: i32) -> (i32, i32) {
    %c0_i32 = arith.constant 0 : i32
    %c0_i32_0 = arith.constant 0 : i32
    %c0_i32_1 = arith.constant 0 : i32
    return %c0_i32, %c0_i32_0 : i32, i32
  }
  func.func @transform_17(%arg0: i32, %arg1: i32) -> (i32, i32, i32) {
    %c0_i32 = arith.constant 0 : i32
    %c0_i32_0 = arith.constant 0 : i32
    return %arg0, %arg1, %c0_i32 : i32, i32, i32
  }
}

</mosaic_0001>

<bundles_post_ra>
// kernel: _lambda_.1
= control target key start
LH: loop header
LB: loop body
LE: loop exit
PB: predicated region body
PF: predicated region fallthrough
CT: control target
= control target key end

     0   :  { %s3732_s0 = inlined_call_operand.vmem [shape: f32[2,3,8,256], index: 0, kind: input, shape index: {}]   ;;  %s3733_s1 = inlined_call_operand.vmem [shape: f32[1,256], index: 1, kind: input, shape index: {}]   ;;  %s3734_s2 = inlined_call_operand.vmem [shape: f32[3,32], index: 2, kind: input, shape index: {}]   ;;  %s3735_s3 = inlined_call_operand.vmem [shape: f32[1,32], index: 3, kind: input, shape index: {}]   ;;  %s3736_s4 = inlined_call_operand.vmem [shape: f32[3,8,48], index: 4, kind: input, shape index: {}]   ;;  %s3737_s5 = inlined_call_operand.vmem [shape: f32[8,48], index: 5, kind: input, shape index: {}]   ;;  %s3738_s6 = inlined_call_operand.vmem [shape: f32[3,8,64], index: 6, kind: input, shape index: {}]   ;;  %s3739_s7 = inlined_call_operand.vmem [shape: f32[8,64], index: 7, kind: input, shape index: {}]   ;;  %s3740_s8 = inlined_call_operand.vmem [shape: f32[4,8], index: 8, kind: input, shape index: {}]   ;;  %s3741_s9 = inlined_call_operand.vmem [shape: f32[8,48], index: 9, kind: input, shape index: {}]   ;;  %s3742_s10 = inlined_call_operand.vmem [shape: f32[8,48], index: 10, kind: input, shape index: {}]   ;;  %s3743_s11 = inlined_call_operand.vmem [shape: f32[1,48], index: 11, kind: input, shape index: {}]   ;;  %s3744_s12 = inlined_call_operand.vmem [shape: f32[16,32], index: 12, kind: input, shape index: {}]   ;;  %s3745_s13 = inlined_call_operand.vmem [shape: f32[1,32], index: 13, kind: input, shape index: {}]   ;;  %s3746_s14 = inlined_call_operand.vmem [shape: f32[32,64], index: 14, kind: input, shape index: {}]   ;;  %s3747_s15 = inlined_call_operand.vmem [shape: f32[32,64], index: 15, kind: input, shape index: {}]   ;;  %s3748_s16 = inlined_call_operand.vmem [shape: f32[1,64], index: 16, kind: input, shape index: {}]   ;;  %s3749_s17 = inlined_call_operand.hbm [shape: f32[2,8,32], index: 17, kind: output, shape index: {}]  }
   0x1   :  { %3753 = sst [smem:[#allocation9_spill]] %s3732_s0 }
   0x2   :  { %3754 = sst [smem:[#allocation10_spill]] %s3733_s1 }
   0x3   :  { %3755 = sst [smem:[#allocation11_spill]] %s3734_s2 }
   0x4   :  { %22 = vsyncpa [#allocation3], 0 }
   0x5   :  { %24 = vsyncpa [#allocation3 + $0x1], 0  ;;  %s2701_s24 = smov 0   ;;  %s2703_s25 = smov 0  }
   0x6   :  { %s2705_s26 = smov 0   ;;  %s2707_s27 = smov 0  }
   0x7   :  { %s2709_s28 = smov 0   ;;  %s2711_s29 = smov 0  }
   0x8 LB: > { %3756 = sst [smem:[#allocation5_spill]] %s2589_s26  ;;  %s2343_s0 = sadd.s32 4294967295, %s2601_s29   ;;  %s2601_s29 = sphi %s2711_s29, %s30_s29   ;;  %s2597_s28 = sphi %s2709_s28, %s3771_s28   ;;  %s2593_s27 = sphi %s2707_s27, %s3767_s27   ;;  %s2589_s26 = sphi %s2705_s26, %s3766_s26   ;;  %s2585_s25 = sphi %s2703_s25, %s3770_s25   ;;  %s2581_s24 = sphi %s2701_s24, %s3769_s24  }
   0x9   : > { %3757 = sst [smem:[#allocation6_spill]] %s2597_s28  ;;  %s2344_s30 = sadd.s32 4294967294, %s2601_s29  }
   0xa   : > { %s42_s18 = sadd.s32 1, %s2597_s28  ;;  %s415_s19 = sadd.s32 1, %s2589_s26 }
   0xb   : > { %p44_p0 = scmp.ge.s32.totalorder %s42_s18, 2  ;;  %p425_p1 = scmp.ne.s32.totalorder %s2589_s26, %s2585_s25 }
   0xc   : > { %p426_p2 = scmp.eq.s32.totalorder %s2343_s0, 1  ;;  %p431_p3 = scmp.ne.s32.totalorder %s2585_s25, %s2581_s24 }
   0xd   : > { %s3773_s18 = smov (%p44_p0, %s42_s18), 0  ;;  %p432_p5 = scmp.eq.s32.totalorder %s2344_s30, 1 }
   0xe   : > { %3758 = sst [smem:[#allocation7_spill]] %s3773_s18  ;;  %p2741_p4 = por %p426_p2, %p425_p1 }
   0xf   : > { %s410_s20 = ssub.s32 %s2597_s28, %s3773_s18  ;;  %p2347_p6 = scmp.ge.s32.totalorder %s2601_s29, 1 }
  0x10   : > { %p413_p7 = scmp.eq.s32.totalorder %s410_s20, 0  ;;  %p2748_p8 = por %p432_p5, %p431_p3 }
  0x11   : > { %p510_p9 = scmp.lt.s32.totalorder %s2601_s29, 3 }
  0x12   : > { %s2754_s22 = scalar_select %p413_p7, %s2589_s26, %s415_s19  }
  0x13   : > { %p511_p10 = pnand %p2347_p6, %p510_p9 }
  0x14   : > { %3761 = sst [smem:[#allocation8_spill]] %s2754_s22  ;;  %p566_p11 = scmp.lt.s32.totalorder (!%p511_p10), %s2593_s27, 1  ;;  %v583_v0 = vlaneseq (!%p511_p10)  ;;  %v2794_v25 = vld [vmem:[%s3736_s4] sm:$0xff] (!%p511_p10)  ;;  %v2814_v31 = vld [vmem:[%s3736_s4 + $0x10] sm:$0xff] (!%p511_p10)  ;;  %v2846_v45 = vld [vmem:[%s3736_s4 + $0x8] sm:$0xff] (!%p511_p10)  ;;  %vm883_vm0 = vcmask (!%p511_p10), 392192  }
  0x15   : > { %514 = sbr.rel (%p511_p10) target bundleno = 2143 (0x85f), region = 88  ;;  %s3762_s20 = sld [smem:[#allocation10_spill]] (!%p511_p10)  ;;  %v2799_v26 = vld [vmem:[%s3738_s6] sm:$0xff] (!%p511_p10)  ;;  %v2821_v33 = vld [vmem:[%s3738_s6 + $0x10] sm:$0xff] (!%p511_p10)  ;;  %v2853_v48 = vld [vmem:[%s3738_s6 + $0x8] sm:$0xff] (!%p511_p10)  ;;  %vm1052_vm1 = vcmask (!%p511_p10), 523264  }
  0x16   : > { %v2759_v1 = vshrl.u32 (!%p511_p10), %v583_v0, 7  ;;  %s3763_s22 = sld [smem:[#allocation9_spill]] (!%p511_p10)  ;;  %s3764_s2 = sld [smem:[#allocation11_spill]] (!%p511_p10) }
  0x17   : > { %s2607_s19 = smov (!%p511_p10), 32   ;;  %s563_s28 = sand.u32 (!%p511_p10), 1, %s2585_s25  }
  0x18   : > { %v2765_v3 = vsub.s32 (!%p511_p10), 0, %v2759_v1  ;;  %v2768_v4 = vsub.s32 (!%p511_p10), 1, %v2759_v1  ;;  %v2784_v22 = vsub.s32 (!%p511_p10), 2, %v2759_v1  ;;  %v2787_v23 = vsub.s32 (!%p511_p10), 3, %v2759_v1 }
  0x19   : > { %v2802_v27 = vsub.s32 (!%p511_p10), 4, %v2759_v1  ;;  %v2805_v28 = vsub.s32 (!%p511_p10), 5, %v2759_v1 }
  0x1b   : > { %v575_v2 = vld [vmem:[%s3762_s20] sm:$0x3] (!%p511_p10)  ;;  %s2609_s20 = smov (!%p511_p10), 96  }
  0x1c   : > { %s567_s23 = scalar_select %p566_p11, %s2593_s27, 1  ;;  %v586_v5 = vrot.slane %v575_v2, %v2765_v3  ;;  %v590_v6 = vrot.slane %v575_v2, %v2768_v4 }
  0x1e   : > { %s2446_s18 = smul.u32 48, %s567_s23 }
  0x20   : > { %s2773_s26 = scalar_lea.vmem %s3763_s22, %s2446_s18  ;;  %s2608_s22 = smov 112  }
  0x21   : > { %v576_v7 = vld [vmem:[%s2773_s26] sm:$0xff]  ;;  %v577_v8 = vld [vmem:[%s2773_s26 + $0x8] sm:$0xff]  ;;  %v2351_v9 = vld [vmem:[%s2773_s26 + $0x10] sm:$0xff]  ;;  %s2348_s18 = sshll.u32 %s563_s28, 3 }
  0x22   : > { %v593_v10 = vmul.f32 %v586_v5, %v576_v7  ;;  %v594_v11 = vmul.f32 %v590_v6, %v577_v8  ;;  %v2352_v12 = vld [vmem:[%s2773_s26 + $0x18] sm:$0xff]  ;;  %v670_v13 = vmul.f32 %v2351_v9, %v586_v5  ;;  %v2356_v14 = vld [vmem:[%s2773_s26 + $0x20] sm:$0xff]  ;;  %v2357_v15 = vld [vmem:[%s2773_s26 + $0x28] sm:$0xff]  ;;  %s565_s23 = scalar_lea.vmem [#allocation2], %s2348_s18 }
  0x23   : > { %v671_v16 = vmul.f32 %v2352_v12, %v590_v6  ;;  %v766_v17 = vmul.f32 %v2356_v14, %v586_v5  ;;  %v767_v18 = vmul.f32 %v2357_v15, %v590_v6  ;;  %v2886_v12 = vld [vmem:[%s3739_s7] sm:$0xff]  ;;  %s2266_s0 = sshll.u32 %s565_s23, 4  ;;  %s3686_s0 = int_to_ptr.vmem [resolvable:$true] %s2266_s0 }
  0x24   : > { %v595_v19 = vadd.f32 %v594_v11, %v593_v10  ;;  %v2881_v11 = vld [vmem:[%s3737_s5] sm:$0xff] }
  0x25   : > { %v768_v20 = vadd.f32 %v767_v18, %v766_v17  ;;  %v672_v21 = vadd.f32 %v671_v16, %v670_v13 }
  0x26   : > { %596 = vadd.xlane.f32.xlu0 %v595_v19 }
  0x27   : > { %769 = vadd.xlane.f32.xlu1 %v768_v20 }
  0x2a   : > { %673 = vadd.xlane.f32.xlu0 %v672_v21 }
  0xb3   : > { %v2789_v24 = vpop.xlane.xlu0 %596 }
  0xb4   : > { %v2807_v29 = vpop.xlane.xlu1 %769  ;;  %v612_v30 = vrot.slane %v2789_v24, %v2768_v4  ;;  %v608_v32 = vrot.slane %v2789_v24, %v2765_v3  ;;  %v616_v34 = vrot.slane %v2789_v24, %v2784_v22  ;;  %v620_v35 = vrot.slane %v2789_v24, %v2787_v23 }
  0xb5   : > { %v785_v36 = vrot.slane %v2807_v29, %v2768_v4  ;;  %v781_v37 = vrot.slane %v2807_v29, %v2765_v3  ;;  %v789_v38 = vrot.slane %v2807_v29, %v2784_v22  ;;  %v2835_v39 = vrot.slane %v2807_v29, %v2787_v23 }
  0xb6   : > { %v647_v40 = vmul.f32 %v2794_v25, %v612_v30  ;;  %v646_v41 = vmul.f32 %v2794_v25, %v608_v32  ;;  %v656_v42 = vmul.f32 %v2799_v26, %v612_v30  ;;  %v655_v43 = vmul.f32 %v2799_v26, %v608_v32 }
  0xb7   : > { %v2841_v44 = vpop.xlane.xlu0 %673  ;;  %v821_v46 = vmul.f32 %v2814_v31, %v785_v36  ;;  %v820_v47 = vmul.f32 %v2814_v31, %v781_v37  ;;  %v831_v49 = vmul.f32 %v2821_v33, %v785_v36  ;;  %v830_v50 = vmul.f32 %v2821_v33, %v781_v37 }
  0xb8   : > { %v689_v51 = vrot.slane %v2841_v44, %v2768_v4  ;;  %v685_v52 = vrot.slane %v2841_v44, %v2765_v3  ;;  %v657_v53 = vmul.f32 %v2799_v26, %v616_v34  ;;  %v693_v54 = vrot.slane %v2841_v44, %v2784_v22 }
  0xb9   : > { %v832_v55 = vmul.f32 %v2821_v33, %v789_v38  ;;  %v648_v56 = vmul.f32 %v2794_v25, %v616_v34  ;;  %v822_v57 = vmul.f32 %v2814_v31, %v789_v38  ;;  %v658_v58 = vmul.f32 %v2799_v26, %v620_v35 }
  0xba   : > { %v725_v59 = vmul.f32 %v2846_v45, %v689_v51  ;;  %v724_v60 = vmul.f32 %v2846_v45, %v685_v52  ;;  %v735_v61 = vmul.f32 %v2853_v48, %v689_v51  ;;  %v734_v62 = vmul.f32 %v2853_v48, %v685_v52 }
  0xbb   : > { %v736_v63 = vmul.f32 %v2853_v48, %v693_v54  ;;  %v726_v2 = vmul.f32 %v2846_v45, %v693_v54  ;;  %v697_v5 = vrot.slane %v2841_v44, %v2787_v23  ;;  %v833_v6 = vmul.f32 %v2821_v33, %v2835_v39 }
  0xbc   : > { %v744_v7 = vadd.f32 %v725_v59, %v647_v40  ;;  %v743_v8 = vadd.f32 %v724_v60, %v646_v41  ;;  %v752_v9 = vadd.f32 %v735_v61, %v656_v42  ;;  %v751_v10 = vadd.f32 %v734_v62, %v655_v43 }
  0xbd   : > { %v753_v13 = vadd.f32 %v736_v63, %v657_v53  ;;  %v745_v14 = vadd.f32 %v726_v2, %v648_v56  ;;  %v737_v15 = vmul.f32 %v2853_v48, %v697_v5  ;;  %v649_v16 = vmul.f32 %v2794_v25, %v620_v35 }
  0xbe   : > { %v840_v17 = vadd.f32 %v821_v46, %v744_v7  ;;  %v839_v18 = vadd.f32 %v820_v47, %v743_v8  ;;  %v848_v19 = vadd.f32 %v831_v49, %v752_v9  ;;  %v847_v20 = vadd.f32 %v830_v50, %v751_v10 }
  0xbf   : > { %v849_v21 = vadd.f32 %v832_v55, %v753_v13  ;;  %v841_v30 = vadd.f32 %v822_v57, %v745_v14  ;;  %v754_v32 = vadd.f32 %v737_v15, %v658_v58  ;;  %v727_v34 = vmul.f32 %v2846_v45, %v697_v5 }
  0xc0   : > { %v2892_v36 = vadd.f32 %v2881_v11, %v840_v17  ;;  %v2895_v37 = vadd.f32 %v2881_v11, %v839_v18  ;;  %v2898_v38 = vadd.f32 %v2886_v12, %v848_v19  ;;  %v2901_v35 = vadd.f32 %v2886_v12, %v847_v20 }
  0xc1   : > { %v2904_v40 = vadd.f32 %v2886_v12, %v849_v21  ;;  %v746_v41 = vadd.f32 %v727_v34, %v649_v16  ;;  %v850_v46 = vadd.f32 %v833_v6, %v754_v32  ;;  %v2911_v47 = vsub.s32 6, %v2759_v1 }
  0xc2   : > { %v887_v42 = vsel %vm883_vm0, %v2892_v36, -inf  ;;  %v884_v43 = vsel %vm883_vm0, %v2895_v37, -inf  ;;  %v1056_v49 = vsel %vm1052_vm1, %v2898_v38, -inf  ;;  %v1053_v50 = vsel %vm1052_vm1, %v2901_v35, -inf }
  0xc3   : > { %888 = vmax.xlane.f32.xlu0 %v887_v42  ;;  %885 = vmax.xlane.f32.xlu1 %v884_v43  ;;  %v2918_v51 = vadd.f32 %v2881_v11, %v841_v30  ;;  %v823_v52 = vmul.f32 %v2814_v31, %v2835_v39  ;;  %v624_v53 = vrot.slane %v2789_v24, %v2802_v27  ;;  %v1059_v57 = vsel %vm1052_vm1, %v2904_v40, -inf }
  0xc4   : > { %v701_v54 = vrot.slane %v2841_v44, %v2802_v27  ;;  %v797_v55 = vrot.slane %v2807_v29, %v2802_v27  ;;  %v628_v56 = vrot.slane %v2789_v24, %v2805_v28  ;;  %v705_v59 = vrot.slane %v2841_v44, %v2805_v28 }
  0xc5   : > { %v842_v58 = vadd.f32 %v823_v52, %v746_v41  ;;  %v801_v39 = vrot.slane %v2807_v29, %v2805_v28  ;;  %v2937_v60 = vadd.f32 %v2886_v12, %v850_v46  ;;  %v659_v61 = vmul.f32 %v2799_v26, %v624_v53 }
  0xc6   : > { %v738_v62 = vmul.f32 %v2853_v48, %v701_v54  ;;  %v834_v63 = vmul.f32 %v2821_v33, %v797_v55  ;;  %v890_v2 = vsel %vm883_vm0, %v2918_v51, -inf  ;;  %v650_v5 = vmul.f32 %v2794_v25, %v624_v53 }
  0xc7   : > { %1057 = vmax.xlane.f32.xlu0 %v1056_v49  ;;  %1054 = vmax.xlane.f32.xlu1 %v1053_v50  ;;  %v728_v6 = vmul.f32 %v2846_v45, %v701_v54  ;;  %v824_v7 = vmul.f32 %v2814_v31, %v797_v55  ;;  %v660_v9 = vmul.f32 %v2799_v26, %v628_v56  ;;  %v2961_v41 = vsub.s32 7, %v2759_v1 }
  0xc8   : > { %v755_v8 = vadd.f32 %v738_v62, %v659_v61  ;;  %v739_v10 = vmul.f32 %v2853_v48, %v705_v59  ;;  %v835_v13 = vmul.f32 %v2821_v33, %v801_v39  ;;  %v2951_v14 = vadd.f32 %v2881_v11, %v842_v58 }
  0xc9   : > { %v747_v15 = vadd.f32 %v728_v6, %v650_v5  ;;  %v651_v16 = vmul.f32 %v2794_v25, %v628_v56  ;;  %v729_v17 = vmul.f32 %v2846_v45, %v705_v59  ;;  %v825_v20 = vmul.f32 %v2814_v31, %v801_v39 }
  0xca   : > { %v851_v18 = vadd.f32 %v834_v63, %v755_v8  ;;  %v756_v19 = vadd.f32 %v739_v10, %v660_v9  ;;  %v632_v21 = vrot.slane %v2789_v24, %v2911_v47  ;;  %v709_v34 = vrot.slane %v2841_v44, %v2911_v47 }
  0xcb   : > { %1060 = vmax.xlane.f32.xlu0 %v1059_v57  ;;  %891 = vmax.xlane.f32.xlu1 %v890_v2  ;;  %v843_v30 = vadd.f32 %v824_v7, %v747_v15  ;;  %v748_v32 = vadd.f32 %v729_v17, %v651_v16  ;;  %v1062_v42 = vsel %vm1052_vm1, %v2937_v60, -inf  ;;  %v805_v49 = vrot.slane %v2807_v29, %v2911_v47 }
  0xcc   : > { %v2966_v43 = vadd.f32 %v2886_v12, %v851_v18  ;;  %v852_v46 = vadd.f32 %v835_v13, %v756_v19  ;;  %v661_v53 = vmul.f32 %v2799_v26, %v632_v21  ;;  %v740_v54 = vmul.f32 %v2853_v48, %v709_v34 }
  0xcd   : > { %v2971_v50 = vadd.f32 %v2881_v11, %v843_v30  ;;  %v844_v52 = vadd.f32 %v825_v20, %v748_v32  ;;  %v893_v55 = vsel %vm883_vm0, %v2951_v14, -inf  ;;  %v836_v56 = vmul.f32 %v2821_v33, %v805_v49 }
  0xce   : > { %v652_v57 = vmul.f32 %v2794_v25, %v632_v21  ;;  %v730_v58 = vmul.f32 %v2846_v45, %v709_v34  ;;  %v757_v59 = vadd.f32 %v740_v54, %v661_v53  ;;  %v826_v39 = vmul.f32 %v2814_v31, %v805_v49 }
  0xcf   : > { %1063 = vmax.xlane.f32.xlu0 %v1062_v42  ;;  %894 = vmax.xlane.f32.xlu1 %v893_v55  ;;  %v1065_v61 = vsel %vm1052_vm1, %v2966_v43, -inf  ;;  %v636_v63 = vrot.slane %v2789_v24, %v2961_v41  ;;  %v713_v2 = vrot.slane %v2841_v44, %v2961_v41  ;;  %v896_v5 = vsel %vm883_vm0, %v2971_v50, -inf }
  0xd0   : > { %v749_v62 = vadd.f32 %v730_v58, %v652_v57  ;;  %v2990_v6 = vadd.f32 %v2886_v12, %v852_v46  ;;  %v2993_v7 = vadd.f32 %v2881_v11, %v844_v52  ;;  %v809_v8 = vrot.slane %v2807_v29, %v2961_v41 }
  0xd1   : > { %v853_v9 = vadd.f32 %v836_v56, %v757_v59  ;;  %v662_v13 = vmul.f32 %v2799_v26, %v636_v63  ;;  %v741_v24 = vmul.f32 %v2853_v48, %v713_v2  ;;  %v653_v15 = vmul.f32 %v2794_v25, %v636_v63 }
  0xd2   : > { %v845_v10 = vadd.f32 %v826_v39, %v749_v62  ;;  %v837_v44 = vmul.f32 %v2821_v33, %v809_v8  ;;  %v731_v16 = vmul.f32 %v2846_v45, %v713_v2  ;;  %v827_v18 = vmul.f32 %v2814_v31, %v809_v8 }
  0xd3   : > { %1066 = vmax.xlane.f32.xlu0 %v1065_v61  ;;  %897 = vmax.xlane.f32.xlu1 %v896_v5  ;;  %v758_v17 = vadd.f32 %v741_v24, %v662_v13  ;;  %v1068_v29 = vsel %vm1052_vm1, %v2990_v6, -inf  ;;  %v899_v26 = vsel %vm883_vm0, %v2993_v7, -inf  ;;  %v3008_v48 = vadd.f32 %v2886_v12, %v853_v9 }
  0xd4   : > { %v750_v19 = vadd.f32 %v731_v16, %v653_v15  ;;  %v3011_v20 = vadd.f32 %v2881_v11, %v845_v10  ;;  %v3028_v42 = vand.u32 127, %v583_v0 }
  0xd5   : > { %v854_v33 = vadd.f32 %v837_v44, %v758_v17  ;;  %v1071_v31 = vsel %vm1052_vm1, %v3008_v48, -inf }
  0xd6   : > { %v846_v25 = vadd.f32 %v827_v18, %v750_v19  ;;  %v902_v45 = vsel %vm883_vm0, %v3011_v20, -inf }
  0xd7   : > { %1069 = vmax.xlane.f32.xlu0 %v1068_v29  ;;  %900 = vmax.xlane.f32.xlu1 %v899_v26  ;;  %v3018_v21 = vadd.f32 %v2886_v12, %v854_v33 }
  0xd8   : > { %v3021_v30 = vadd.f32 %v2881_v11, %v846_v25 }
  0xd9   : > { %v1074_v32 = vsel %vm1052_vm1, %v3018_v21, -inf }
  0xda   : > { %v905_v34 = vsel %vm883_vm0, %v3021_v30, -inf }
  0xdb   : > { %1072 = vmax.xlane.f32.xlu0 %v1071_v31  ;;  %903 = vmax.xlane.f32.xlu1 %v902_v45 }
  0xdf   : > { %1075 = vmax.xlane.f32.xlu0 %v1074_v32  ;;  %906 = vmax.xlane.f32.xlu1 %v905_v34 }
 0x150   : > { %v889_v46 = vpop.xlane.xlu0 %888  ;;  %v886_v49 = vpop.xlane.xlu1 %885 }
 0x151   : > { %vm909_vm2 = vcmp.eq.f32.partialorder %v2892_v36, %v889_v46  ;;  %vm908_vm3 = vcmp.eq.f32.partialorder %v2895_v37, %v886_v49 }
 0x152   : > { %v917_v11 = vsel %vm909_vm2, %v3028_v42, 48  ;;  %v916_v12 = vsel %vm908_vm3, %v3028_v42, 48 }
 0x153   : > { %v3035_v52 = vsel %vm883_vm0, %v917_v11, 2147483647  ;;  %v3038_v53 = vsel %vm883_vm0, %v916_v12, 2147483647 }
 0x154   : > { %v1058_v54 = vpop.xlane.xlu0 %1057  ;;  %v1055_v55 = vpop.xlane.xlu1 %1054  ;;  %v941_v0 = vshra.s32 %v3035_v52, 16  ;;  %v926_v56 = vshra.s32 %v3038_v53, 16 }
 0x155   : > { %vm1078_vm4 = vcmp.eq.f32.partialorder %v2898_v38, %v1058_v54  ;;  %vm1077_vm5 = vcmp.eq.f32.partialorder %v2901_v35, %v1055_v55 }
 0x156   : > { %v1086_v36 = vsel %vm1078_vm4, %v3028_v42, 64  ;;  %v1085_v37 = vsel %vm1077_vm5, %v3028_v42, 64  ;;  %v3046_v57 = vcvt.s32.f32 %v941_v0  ;;  %v3048_v58 = vcvt.s32.f32 %v926_v56 }
 0x157   : > { %v3051_v59 = vsel %vm1052_vm1, %v1086_v36, 2147483647  ;;  %v3054_v39 = vsel %vm1052_vm1, %v1085_v37, 2147483647 }
 0x158   : > { %944 = vmin.xlane.f32.xlu0 %v3046_v57  ;;  %v1061_v61 = vpop.xlane.xlu0 %1060  ;;  %929 = vmin.xlane.f32.xlu1 %v3048_v58  ;;  %v892_v38 = vpop.xlane.xlu1 %891  ;;  %v1110_v35 = vshra.s32 %v3051_v59, 16  ;;  %v1095_v62 = vshra.s32 %v3054_v39, 16 }
 0x159   : > { %vm1079_vm6 = vcmp.eq.f32.partialorder %v2904_v40, %v1061_v61  ;;  %vm910_vm7 = vcmp.eq.f32.partialorder %v2918_v51, %v892_v38 }
 0x15a   : > { %v1087_v63 = vsel %vm1079_vm6, %v3028_v42, 64  ;;  %v918_v2 = vsel %vm910_vm7, %v3028_v42, 48  ;;  %v3064_v5 = vcvt.s32.f32 %v1110_v35  ;;  %v3066_v8 = vcvt.s32.f32 %v1095_v62 }
 0x15b   : > { %v3069_v9 = vsel %vm1052_vm1, %v1087_v63, 2147483647  ;;  %v3072_v10 = vsel %vm883_vm0, %v918_v2, 2147483647 }
 0x15c   : > { %1113 = vmin.xlane.f32.xlu0 %v3064_v5  ;;  %v1064_v13 = vpop.xlane.xlu0 %1063  ;;  %1098 = vmin.xlane.f32.xlu1 %v3066_v8  ;;  %v895_v40 = vpop.xlane.xlu1 %894  ;;  %v1125_v51 = vshra.s32 %v3069_v9, 16  ;;  %v956_v24 = vshra.s32 %v3072_v10, 16 }
 0x15d   : > { %vm1080_vm8 = vcmp.eq.f32.partialorder %v2937_v60, %v1064_v13  ;;  %vm911_vm9 = vcmp.eq.f32.partialorder %v2951_v14, %v895_v40 }
 0x15e   : > { %v1088_v44 = vsel %vm1080_vm8, %v3028_v42, 64  ;;  %v919_v15 = vsel %vm911_vm9, %v3028_v42, 48  ;;  %v3082_v16 = vcvt.s32.f32 %v1125_v51  ;;  %v3084_v17 = vcvt.s32.f32 %v956_v24 }
 0x15f   : > { %v3087_v18 = vsel %vm1052_vm1, %v1088_v44, 2147483647  ;;  %v3090_v29 = vsel %vm883_vm0, %v919_v15, 2147483647 }
 0x160   : > { %1128 = vmin.xlane.f32.xlu0 %v3082_v16  ;;  %v1067_v19 = vpop.xlane.xlu0 %1066  ;;  %959 = vmin.xlane.f32.xlu1 %v3084_v17  ;;  %v898_v60 = vpop.xlane.xlu1 %897  ;;  %v1140_v14 = vshra.s32 %v3087_v18, 16  ;;  %v971_v26 = vshra.s32 %v3090_v29, 16 }
 0x161   : > { %vm1081_vm10 = vcmp.eq.f32.partialorder %v2966_v43, %v1067_v19  ;;  %vm912_vm11 = vcmp.eq.f32.partialorder %v2971_v50, %v898_v60 }
 0x162   : > { %v1089_v33 = vsel %vm1081_vm10, %v3028_v42, 64  ;;  %v920_v25 = vsel %vm912_vm11, %v3028_v42, 48  ;;  %v3100_v31 = vcvt.s32.f32 %v1140_v14  ;;  %v3102_v45 = vcvt.s32.f32 %v971_v26 }
 0x163   : > { %v3105_v32 = vsel %vm1052_vm1, %v1089_v33, 2147483647  ;;  %v3108_v34 = vsel %vm883_vm0, %v920_v25, 2147483647  ;;  %v940_v33 = vand.u32 65535, %v3035_v52  ;;  %v925_v25 = vand.u32 65535, %v3038_v53 }
 0x164   : > { %1143 = vmin.xlane.f32.xlu0 %v3100_v31  ;;  %v1070_v46 = vpop.xlane.xlu0 %1069  ;;  %974 = vmin.xlane.f32.xlu1 %v3102_v45  ;;  %v901_v43 = vpop.xlane.xlu1 %900  ;;  %v1155_v50 = vshra.s32 %v3105_v32, 16  ;;  %v986_v49 = vshra.s32 %v3108_v34, 16 }
 0x165   : > { %vm1082_vm12 = vcmp.eq.f32.partialorder %v2990_v6, %v1070_v46  ;;  %vm913_vm13 = vcmp.eq.f32.partialorder %v2993_v7, %v901_v43 }
 0x166   : > { %v1090_v11 = vsel %vm1082_vm12, %v3028_v42, 64  ;;  %v921_v12 = vsel %vm913_vm13, %v3028_v42, 48  ;;  %v3118_v54 = vcvt.s32.f32 %v1155_v50  ;;  %v3120_v55 = vcvt.s32.f32 %v986_v49 }
 0x167   : > { %v3123_v0 = vsel %vm1052_vm1, %v1090_v11, 2147483647  ;;  %v3126_v56 = vsel %vm883_vm0, %v921_v12, 2147483647  ;;  %v942_v50 = vcvt.s32.f32 %v940_v33  ;;  %v927_v49 = vcvt.s32.f32 %v925_v25 }
 0x168   : > { %1158 = vmin.xlane.f32.xlu0 %v3118_v54  ;;  %v1073_v36 = vpop.xlane.xlu0 %1072  ;;  %989 = vmin.xlane.f32.xlu1 %v3120_v55  ;;  %v904_v6 = vpop.xlane.xlu1 %903  ;;  %v1170_v7 = vshra.s32 %v3123_v0, 16  ;;  %v1001_v37 = vshra.s32 %v3126_v56, 16  ;;  %v1109_v11 = vand.u32 65535, %v3051_v59  ;;  %v1094_v12 = vand.u32 65535, %v3054_v39 }
 0x169   : > { %vm1083_vm14 = vcmp.eq.f32.partialorder %v3008_v48, %v1073_v36  ;;  %vm914_vm15 = vcmp.eq.f32.partialorder %v3011_v20, %v904_v6  ;;  %v1124_v59 = vand.u32 65535, %v3069_v9  ;;  %v955_v39 = vand.u32 65535, %v3072_v10 }
 0x16a   : > { %v1091_v61 = vsel %vm1083_vm14, %v3028_v42, 64  ;;  %v922_v38 = vsel %vm914_vm15, %v3028_v42, 48  ;;  %v3136_v35 = vcvt.s32.f32 %v1170_v7  ;;  %v3138_v62 = vcvt.s32.f32 %v1001_v37 }
 0x16b   : > { %v3141_v63 = vsel %vm1052_vm1, %v1091_v61, 2147483647  ;;  %v3144_v2 = vsel %vm883_vm0, %v922_v38, 2147483647  ;;  %v1111_v7 = vcvt.s32.f32 %v1109_v11  ;;  %v1096_v37 = vcvt.s32.f32 %v1094_v12 }
 0x16c   : > { %1173 = vmin.xlane.f32.xlu0 %v3136_v35  ;;  %v1076_v13 = vpop.xlane.xlu0 %1075  ;;  %1004 = vmin.xlane.f32.xlu1 %v3138_v62  ;;  %v907_v48 = vpop.xlane.xlu1 %906  ;;  %v1185_v20 = vshra.s32 %v3141_v63, 16  ;;  %v1016_v40 = vshra.s32 %v3144_v2, 16  ;;  %v1139_v9 = vand.u32 65535, %v3087_v18  ;;  %v970_v10 = vand.u32 65535, %v3090_v29 }
 0x16d   : > { %vm1084_vm2 = vcmp.eq.f32.partialorder %v3018_v21, %v1076_v13  ;;  %vm915_vm3 = vcmp.eq.f32.partialorder %v3021_v30, %v907_v48  ;;  %v1126_v13 = vcvt.s32.f32 %v1124_v59  ;;  %v957_v48 = vcvt.s32.f32 %v955_v39 }
 0x16e   : > { %v1092_v51 = vsel %vm1084_vm2, %v3028_v42, 64  ;;  %v923_v24 = vsel %vm915_vm3, %v3028_v42, 48  ;;  %v3154_v44 = vcvt.s32.f32 %v1185_v20  ;;  %v3156_v15 = vcvt.s32.f32 %v1016_v40 }
 0x16f   : > { %v3159_v19 = vsel %vm1052_vm1, %v1092_v51, 2147483647  ;;  %v3162_v60 = vsel %vm883_vm0, %v923_v24, 2147483647  ;;  %v1141_v51 = vcvt.s32.f32 %v1139_v9  ;;  %v972_v24 = vcvt.s32.f32 %v970_v10 }
 0x170   : > { %1188 = vmin.xlane.f32.xlu0 %v3154_v44  ;;  %1019 = vmin.xlane.f32.xlu1 %v3156_v15  ;;  %v1200_v21 = vshra.s32 %v3159_v19, 16  ;;  %v1031_v30 = vshra.s32 %v3162_v60, 16  ;;  %v1154_v18 = vand.u32 65535, %v3105_v32  ;;  %v985_v29 = vand.u32 65535, %v3108_v34 }
 0x171   : > { %v1169_v32 = vand.u32 65535, %v3123_v0  ;;  %v1000_v34 = vand.u32 65535, %v3126_v56  ;;  %v1184_v0 = vand.u32 65535, %v3141_v63  ;;  %v1015_v56 = vand.u32 65535, %v3144_v2 }
 0x172   : > { %v3168_v14 = vcvt.s32.f32 %v1200_v21  ;;  %v3170_v26 = vcvt.s32.f32 %v1031_v30  ;;  %v1156_v33 = vcvt.s32.f32 %v1154_v18  ;;  %v987_v25 = vcvt.s32.f32 %v985_v29 }
 0x173   : > { %v1171_v11 = vcvt.s32.f32 %v1169_v32  ;;  %v1002_v12 = vcvt.s32.f32 %v1000_v34  ;;  %v1199_v63 = vand.u32 65535, %v3159_v19  ;;  %v1030_v2 = vand.u32 65535, %v3162_v60 }
 0x174   : > { %1203 = vmin.xlane.f32.xlu0 %v3168_v14  ;;  %1034 = vmin.xlane.f32.xlu1 %v3170_v26 }
 0x1e5   : > { %v3176_v46 = vpop.xlane.xlu0 %944  ;;  %v3178_v43 = vpop.xlane.xlu1 %929 }
 0x1e6   : > { %vm946_vm0 = vcmp.eq.f32.partialorder %v3046_v57, %v3176_v46  ;;  %vm931_vm1 = vcmp.eq.f32.partialorder %v3048_v58, %v3178_v43  ;;  %v951_v9 = vcvt.f32.s32 %v3176_v46  ;;  %v936_v10 = vcvt.f32.s32 %v3178_v43 }
 0x1e7   : > { %v947_v36 = vsel %vm946_vm0, %v942_v50, inf  ;;  %v932_v52 = vsel %vm931_vm1, %v927_v49, inf  ;;  %vm1262_vm0 = vcmask 1041409   ;;  %vm1264_vm1 = vcmask 1042434  }
 0x1e8   : > { %948 = vmin.xlane.f32.xlu0 %v947_v36  ;;  %933 = vmin.xlane.f32.xlu1 %v932_v52 }
 0x1e9   : > { %v3186_v53 = vpop.xlane.xlu0 %1113  ;;  %v3188_v6 = vpop.xlane.xlu1 %1098 }
 0x1ea   : > { %vm1115_vm4 = vcmp.eq.f32.partialorder %v3064_v5, %v3186_v53  ;;  %vm1100_vm5 = vcmp.eq.f32.partialorder %v3066_v8, %v3188_v6 }
 0x1eb   : > { %v1116_v57 = vsel %vm1115_vm4, %v1111_v7, inf  ;;  %v1101_v58 = vsel %vm1100_vm5, %v1096_v37, inf  ;;  %v1186_v7 = vcvt.s32.f32 %v1184_v0  ;;  %v1017_v37 = vcvt.s32.f32 %v1015_v56 }
 0x1ec   : > { %1117 = vmin.xlane.f32.xlu0 %v1116_v57  ;;  %1102 = vmin.xlane.f32.xlu1 %v1101_v58  ;;  %v1201_v57 = vcvt.s32.f32 %v1199_v63  ;;  %v1032_v58 = vcvt.s32.f32 %v1030_v2  ;;  %vm1266_vm4 = vcmask 1043459   ;;  %vm1268_vm5 = vcmask 1044484  }
 0x1ed   : > { %v3196_v61 = vpop.xlane.xlu0 %1128  ;;  %v3198_v38 = vpop.xlane.xlu1 %959 }
 0x1ee   : > { %vm1130_vm6 = vcmp.eq.f32.partialorder %v3082_v16, %v3196_v61  ;;  %vm961_vm7 = vcmp.eq.f32.partialorder %v3084_v17, %v3198_v38 }
 0x1ef   : > { %v1131_v5 = vsel %vm1130_vm6, %v1126_v13, inf  ;;  %v962_v8 = vsel %vm961_vm7, %v957_v48, inf  ;;  %vm1270_vm6 = vcmask 1045509   ;;  %vm1272_vm7 = vcmask 1046534  }
 0x1f0   : > { %1132 = vmin.xlane.f32.xlu0 %v1131_v5  ;;  %963 = vmin.xlane.f32.xlu1 %v962_v8  ;;  %v1120_v5 = vcvt.f32.s32 %v3186_v53  ;;  %v1105_v8 = vcvt.f32.s32 %v3188_v6  ;;  %v952_v53 = vshll.u32 %v951_v9, 16  ;;  %v937_v6 = vshll.u32 %v936_v10, 16 }
 0x1f1   : > { %v3206_v20 = vpop.xlane.xlu0 %1143  ;;  %v3208_v40 = vpop.xlane.xlu1 %974 }
 0x1f2   : > { %vm1145_vm8 = vcmp.eq.f32.partialorder %v3100_v31, %v3206_v20  ;;  %vm976_vm9 = vcmp.eq.f32.partialorder %v3102_v45, %v3208_v40 }
 0x1f3   : > { %v1146_v16 = vsel %vm1145_vm8, %v1141_v51, inf  ;;  %v977_v17 = vsel %vm976_vm9, %v972_v24, inf  ;;  %v1150_v51 = vcvt.f32.s32 %v3206_v20  ;;  %v981_v24 = vcvt.f32.s32 %v3208_v40 }
 0x1f4   : > { %1147 = vmin.xlane.f32.xlu0 %v1146_v16  ;;  %978 = vmin.xlane.f32.xlu1 %v977_v17  ;;  %v3264_v16 = vsub.s32 %v3028_v42, %v2759_v1  ;;  %v1121_v17 = vshll.u32 %v1120_v5, 16  ;;  %vm1274_vm8 = vcmask 1047559   ;;  %vm1277_vm9 = vcmask 64512  }
 0x1f5   : > { %v3216_v21 = vpop.xlane.xlu0 %1158  ;;  %v3218_v30 = vpop.xlane.xlu1 %989  ;;  %v982_v20 = vshll.u32 %v981_v24, 16 }
 0x1f6   : > { %vm1160_vm10 = vcmp.eq.f32.partialorder %v3118_v54, %v3216_v21  ;;  %vm991_vm11 = vcmp.eq.f32.partialorder %v3120_v55, %v3218_v30  ;;  %v1165_v46 = vcvt.f32.s32 %v3216_v21  ;;  %v996_v43 = vcvt.f32.s32 %v3218_v30 }
 0x1f7   : > { %v1161_v31 = vsel %vm1160_vm10, %v1156_v33, inf  ;;  %v992_v45 = vsel %vm991_vm11, %v987_v25, inf  ;;  %v1151_v25 = vshll.u32 %v1150_v51, 16  ;;  %vm2605_vm10 = vmmov 0  }
 0x1f8   : > { %1162 = vmin.xlane.f32.xlu0 %v1161_v31  ;;  %993 = vmin.xlane.f32.xlu1 %v992_v45  ;;  %v1166_v42 = vshll.u32 %v1165_v46, 16  ;;  %vm2074_vm11 = vcmask 261120  }
 0x1f9   : > { %v3226_v50 = vpop.xlane.xlu0 %1173  ;;  %v3228_v49 = vpop.xlane.xlu1 %1004 }
 0x1fa   : > { %vm1175_vm12 = vcmp.eq.f32.partialorder %v3136_v35, %v3226_v50  ;;  %vm1006_vm13 = vcmp.eq.f32.partialorder %v3138_v62, %v3228_v49  ;;  %v1180_v34 = vcvt.f32.s32 %v3226_v50  ;;  %v1011_v21 = vcvt.f32.s32 %v3228_v49 }
 0x1fb   : > { %v1176_v54 = vsel %vm1175_vm12, %v1171_v11, inf  ;;  %v1007_v55 = vsel %vm1006_vm13, %v1002_v12, inf  ;;  %v997_v11 = vshll.u32 %v996_v43, 16  ;;  %vm1992_vm12 = vcmask 130048  }
 0x1fc   : > { %1177 = vmin.xlane.f32.xlu0 %v1176_v54  ;;  %1008 = vmin.xlane.f32.xlu1 %v1007_v55 }
 0x1fd   : > { %v3236_v36 = vpop.xlane.xlu0 %1188  ;;  %v3238_v52 = vpop.xlane.xlu1 %1019 }
 0x1fe   : > { %vm1190_vm14 = vcmp.eq.f32.partialorder %v3154_v44, %v3236_v36  ;;  %vm1021_vm15 = vcmp.eq.f32.partialorder %v3156_v15, %v3238_v52  ;;  %v1195_v12 = vcvt.f32.s32 %v3236_v36  ;;  %v1026_v0 = vcvt.f32.s32 %v3238_v52 }
 0x1ff   : > { %v1191_v35 = vsel %vm1190_vm14, %v1186_v7, inf  ;;  %v1022_v62 = vsel %vm1021_vm15, %v1017_v37, inf  ;;  %v1012_v36 = vshll.u32 %v1011_v21, 16 }
 0x200   : > { %1192 = vmin.xlane.f32.xlu0 %v1191_v35  ;;  %1023 = vmin.xlane.f32.xlu1 %v1022_v62  ;;  %v1181_v35 = vshll.u32 %v1180_v34, 16 }
 0x201   : > { %v3246_v59 = vpop.xlane.xlu0 %1203  ;;  %v3248_v39 = vpop.xlane.xlu1 %1034 }
 0x202   : > { %vm1205_vm2 = vcmp.eq.f32.partialorder %v3168_v14, %v3246_v59  ;;  %vm1036_vm3 = vcmp.eq.f32.partialorder %v3170_v26, %v3248_v39  ;;  %v1135_v14 = vcvt.f32.s32 %v3196_v61  ;;  %v966_v26 = vcvt.f32.s32 %v3198_v38 }
 0x203   : > { %v1206_v44 = vsel %vm1205_vm2, %v1201_v57, inf  ;;  %v1037_v19 = vsel %vm1036_vm3, %v1032_v58, inf  ;;  %v1106_v61 = vshll.u32 %v1105_v8, 16  ;;  %v1210_v56 = vcvt.f32.s32 %v3246_v59 }
 0x204   : > { %1207 = vmin.xlane.f32.xlu0 %v1206_v44  ;;  %1038 = vmin.xlane.f32.xlu1 %v1037_v19  ;;  %v1136_v33 = vshll.u32 %v1135_v14, 16  ;;  %v967_v38 = vshll.u32 %v966_v26, 16  ;;  %v1041_v55 = vcvt.f32.s32 %v3248_v39  ;;  %v1196_v44 = vshll.u32 %v1195_v12, 16 }
 0x205   : > { %v1027_v19 = vshll.u32 %v1026_v0, 16  ;;  %v1211_v39 = vshll.u32 %v1210_v56, 16 }
 0x275   : > { %v949_v15 = vpop.xlane.xlu0 %948  ;;  %v934_v60 = vpop.xlane.xlu1 %933 }
 0x276   : > { %v950_v31 = vcvt.f32.s32 %v949_v15  ;;  %v935_v45 = vcvt.f32.s32 %v934_v60  ;;  %v1042_v60 = vshll.u32 %v1041_v55, 16 }
 0x278   : > { %v3274_v62 = vadd.s32 %v952_v53, %v950_v31  ;;  %v3276_v57 = vadd.s32 %v937_v6, %v935_v45 }
 0x279   : > { %v1118_v13 = vpop.xlane.xlu0 %1117  ;;  %v1103_v48 = vpop.xlane.xlu1 %1102 }
 0x27a   : > { %v1119_v1 = vcvt.f32.s32 %v1118_v13  ;;  %v1104_v30 = vcvt.f32.s32 %v1103_v48  ;;  %v1045_v8 = vcvt.s32.f32 %v3274_v62  ;;  %v1044_v14 = vcvt.s32.f32 %v3276_v57 }
 0x27c   : > { %v3278_v49 = vadd.s32 %v1121_v17, %v1119_v1  ;;  %v3280_v58 = vadd.s32 %v1106_v61, %v1104_v30 }
 0x27d   : > { %v1133_v18 = vpop.xlane.xlu0 %1132  ;;  %v964_v29 = vpop.xlane.xlu1 %963 }
 0x27e   : > { %v1134_v54 = vcvt.f32.s32 %v1133_v18  ;;  %v965_v7 = vcvt.f32.s32 %v964_v29  ;;  %v1214_v26 = vcvt.s32.f32 %v3278_v49  ;;  %v1213_v24 = vcvt.s32.f32 %v3280_v58 }
 0x280   : > { %v3282_v15 = vadd.s32 %v1136_v33, %v1134_v54  ;;  %v3284_v13 = vadd.s32 %v967_v38, %v965_v7  ;;  %v1296_v31 = vrot.slane %v1214_v26, %v3264_v16  ;;  %v1292_v45 = vrot.slane %v1213_v24, %v3264_v16 }
 0x281   : > { %v1148_v32 = vpop.xlane.xlu0 %1147  ;;  %v979_v40 = vpop.xlane.xlu1 %978 }
 0x282   : > { %v1149_v37 = vcvt.f32.s32 %v1148_v32  ;;  %v980_v50 = vcvt.f32.s32 %v979_v40  ;;  %v1215_v43 = vcvt.s32.f32 %v3282_v15  ;;  %v1046_v6 = vcvt.s32.f32 %v3284_v13 }
 0x283   : > { %v1233_v32 = vrot.slane %v1044_v14, %v3264_v16 }
 0x284   : > { %v3286_v48 = vadd.s32 %v1151_v25, %v1149_v37  ;;  %v3288_v9 = vadd.s32 %v982_v20, %v980_v50  ;;  %v1237_v20 = vrot.slane %v1045_v8, %v3264_v16  ;;  %v1300_v0 = vrot.slane %v1215_v43, %v3264_v16 }
 0x285   : > { %v1163_v63 = vpop.xlane.xlu0 %1162  ;;  %v994_v2 = vpop.xlane.xlu1 %993  ;;  %v1241_v56 = vrot.slane %v1046_v6, %v3264_v16 }
 0x286   : > { %v1164_v52 = vcvt.f32.s32 %v1163_v63  ;;  %v995_v59 = vcvt.f32.s32 %v994_v2  ;;  %v1216_v17 = vcvt.s32.f32 %v3286_v48  ;;  %v1047_v61 = vcvt.s32.f32 %v3288_v9 }
 0x288   : > { %v3294_v18 = vadd.s32 %v1166_v42, %v1164_v52  ;;  %v3296_v29 = vadd.s32 %v997_v11, %v995_v59  ;;  %v1304_v54 = vrot.slane %v1216_v17, %v3264_v16  ;;  %v1245_v55 = vrot.slane %v1047_v61, %v3264_v16 }
 0x289   : > { %v1178_v10 = vpop.xlane.xlu0 %1177  ;;  %v1009_v5 = vpop.xlane.xlu1 %1008  ;;  %v1321_v52 = vsel %vm1262_vm0, %v1296_v31, %v1292_v45 }
 0x28a   : > { %v1179_v51 = vcvt.f32.s32 %v1178_v10  ;;  %v1010_v46 = vcvt.f32.s32 %v1009_v5  ;;  %v1217_v1 = vcvt.s32.f32 %v3294_v18  ;;  %v1048_v42 = vcvt.s32.f32 %v3296_v29 }
 0x28c   : > { %v3299_v53 = vadd.s32 %v1181_v35, %v1179_v51  ;;  %v3304_v33 = vadd.s32 %v1012_v36, %v1010_v46  ;;  %v1263_v36 = vsel %vm1262_vm0, %v1237_v20, %v1233_v32  ;;  %v1308_v59 = vrot.slane %v1217_v1, %v3264_v16 }
 0x28d   : > { %v1193_v38 = vpop.xlane.xlu0 %1192  ;;  %v1024_v25 = vpop.xlane.xlu1 %1023  ;;  %v1322_v46 = vsel %vm1264_vm1, %v1300_v0, %v1321_v52 }
 0x28e   : > { %v1194_v40 = vcvt.f32.s32 %v1193_v38  ;;  %v1025_v34 = vcvt.f32.s32 %v1024_v25  ;;  %v1218_v11 = vcvt.s32.f32 %v3299_v53  ;;  %v1049_v21 = vcvt.s32.f32 %v3304_v33 }
 0x28f   : > { %v1265_v33 = vsel %vm1264_vm1, %v1241_v56, %v1263_v36  ;;  %v1323_v20 = vsel %vm1266_vm4, %v1304_v54, %v1322_v46 }
 0x290   : > { %v3322_v30 = vadd.s32 %v1196_v44, %v1194_v40  ;;  %v3324_v12 = vadd.s32 %v1027_v19, %v1025_v34  ;;  %v1249_v44 = vrot.slane %v1048_v42, %v3264_v16  ;;  %v1312_v19 = vrot.slane %v1218_v11, %v3264_v16 }
 0x291   : > { %v1208_v7 = vpop.xlane.xlu0 %1207  ;;  %v1039_v37 = vpop.xlane.xlu1 %1038  ;;  %v1253_v10 = vrot.slane %v1049_v21, %v3264_v16  ;;  %v1267_v32 = vsel %vm1266_vm4, %v1245_v55, %v1265_v33 }
 0x292   : > { %v1219_v50 = vcvt.s32.f32 %v3322_v30  ;;  %v1050_v63 = vcvt.s32.f32 %v3324_v12  ;;  %v1209_v2 = vcvt.f32.s32 %v1208_v7  ;;  %v1040_v35 = vcvt.f32.s32 %v1039_v37 }
 0x294   : > { %v3352_v5 = vadd.s32 %v1211_v39, %v1209_v2  ;;  %v1043_v51 = vadd.s32 %v1042_v60, %v1040_v35  ;;  %v1316_v38 = vrot.slane %v1219_v50, %v3264_v16  ;;  %v1257_v25 = vrot.slane %v1050_v63, %v3264_v16 }
 0x295   : > { %v1324_v39 = vsel %vm1268_vm5, %v1308_v59, %v1323_v20  ;;  %v1269_v60 = vsel %vm1268_vm5, %v1249_v44, %v1267_v32  ;;  %v2603_v35 = vmov 0  }
 0x296   : > { %v1220_v40 = vcvt.s32.f32 %v3352_v5  ;;  %v1051_v34 = vcvt.s32.f32 %v1043_v51  ;;  %v1325_v12 = vsel %vm1270_vm6, %v1312_v19, %v1324_v39  ;;  %v1271_v0 = vsel %vm1270_vm6, %v1253_v10, %v1269_v60  ;;  %2510 = vset.pattern.permute.xlu0 %v2603_v35  ;;  %2509 = vset.pattern.permute.xlu1 %v2603_v35 }
 0x297   : > { %v1326_v56 = vsel %vm1272_vm7, %v1316_v38, %v1325_v12  ;;  %v1273_v54 = vsel %vm1272_vm7, %v1257_v25, %v1271_v0 }
 0x298   : > { %v1320_v31 = vrot.slane %v1220_v40, %v3264_v16  ;;  %v1261_v45 = vrot.slane %v1051_v34, %v3264_v16 }
 0x29a   : > { %v1327_v55 = vsel %vm1274_vm8, %v1320_v31, %v1326_v56  ;;  %v1275_v7 = vsel %vm1274_vm8, %v1261_v45, %v1273_v54 }
 0x29b   : > { %v1329_v37 = vsel %vm1277_vm9, %v1327_v55, 0.0  ;;  %v1278_v2 = vsel %vm1277_vm9, %v1275_v7, 0.0 }
 0x29c   : > { %1330 = vadd.xlane.f32.xlu0 %v1329_v37  ;;  %1279 = vadd.xlane.f32.xlu1 %v1278_v2 }
 0x329   : > { %v1331_v36 = vpop.xlane.xlu0 %1330  ;;  %v1280_v52 = vpop.xlane.xlu1 %1279 }
 0x32a   : > { %v1332_v59 = vadd.f32 %v1331_v36, %v1280_v52 }
 0x32c   : > { %v1334_v44 = vmul.f32 0.0625, %v1332_v59 }
 0x32e   : > { %v1343_v19 = vrot.slane %v1334_v44, %v2768_v4  ;;  %v1339_v10 = vrot.slane %v1334_v44, %v2765_v3  ;;  %v1359_v51 = vrot.slane %v1334_v44, %v2805_v28  ;;  %v1363_v38 = vrot.slane %v1334_v44, %v2911_v47 }
 0x32f   : > { %v1367_v62 = vrot.slane %v1334_v44, %v2961_v41  ;;  %v1347_v57 = vrot.slane %v1334_v44, %v2784_v22  ;;  %v1351_v12 = vrot.slane %v1334_v44, %v2787_v23 }
 0x330   : > { %v3382_v46 = vsub.f32 %v1045_v8, %v1343_v19  ;;  %v3386_v33 = vsub.f32 %v1044_v14, %v1339_v10  ;;  %v3393_v32 = vsub.f32 %v1049_v21, %v1359_v51  ;;  %v3397_v39 = vsub.f32 %v1213_v24, %v1339_v10 }
 0x331   : > { %v3405_v60 = vsub.f32 %v1050_v63, %v1363_v38  ;;  %v3409_v21 = vsub.f32 %v1214_v26, %v1343_v19  ;;  %v3415_v31 = vsub.f32 %v1051_v34, %v1367_v62  ;;  %v3419_v45 = vsub.f32 %v1046_v6, %v1347_v57 }
 0x332   : > { %v1385_v25 = vmul.f32 %v3382_v46, %v3382_v46  ;;  %v1384_v20 = vmul.f32 %v3386_v33, %v3386_v33  ;;  %v1389_v8 = vmul.f32 %v3393_v32, %v3393_v32  ;;  %v1475_v14 = vmul.f32 %v3397_v39, %v3397_v39 }
 0x333   : > { %v1390_v58 = vmul.f32 %v3405_v60, %v3405_v60  ;;  %v1476_v24 = vmul.f32 %v3409_v21, %v3409_v21  ;;  %v1391_v49 = vmul.f32 %v3415_v31, %v3415_v31  ;;  %v1386_v26 = vmul.f32 %v3419_v45, %v3419_v45 }
 0x334   : > { %1404 = vperm.xlu0 %2510, %v1385_v25   ;;  %1401 = vperm.xlu1 %2509, %v1384_v20   ;;  %v3427_v63 = vsub.f32 %v1215_v43, %v1347_v57  ;;  %v3434_v6 = vsub.f32 %v1047_v61, %v1351_v12  ;;  %v3440_v15 = vsub.f32 %v1216_v17, %v1351_v12 }
 0x335   : > { %v1355_v43 = vrot.slane %v1334_v44, %v2802_v27  ;;  %v3459_v17 = vsub.f32 %v1218_v11, %v1359_v51 }
 0x336   : > { %v1477_v13 = vmul.f32 %v3427_v63, %v3427_v63  ;;  %v1387_v34 = vmul.f32 %v3434_v6, %v3434_v6  ;;  %v1478_v0 = vmul.f32 %v3440_v15, %v3440_v15 }
 0x337   : > { %v3447_v56 = vsub.f32 %v1048_v42, %v1355_v43  ;;  %v3453_v61 = vsub.f32 %v1217_v1, %v1355_v43  ;;  %v1480_v29 = vmul.f32 %v3459_v17, %v3459_v17  ;;  %v3465_v42 = vsub.f32 %v1219_v50, %v1363_v38 }
 0x338   : > { %1416 = vperm.xlu0 %2510, %v1389_v8   ;;  %1492 = vperm.xlu1 %2509, %v1475_v14   ;;  %v3471_v1 = vsub.f32 %v1220_v40, %v1367_v62 }
 0x339   : > { %v1388_v9 = vmul.f32 %v3447_v56, %v3447_v56  ;;  %v1479_v48 = vmul.f32 %v3453_v61, %v3453_v61  ;;  %v1481_v18 = vmul.f32 %v3465_v42, %v3465_v42 }
 0x33a   : > { %v1482_v53 = vmul.f32 %v3471_v1, %v3471_v1 }
 0x33c   : > { %1419 = vperm.xlu0 %2510, %v1390_v58   ;;  %1495 = vperm.xlu1 %2509, %v1476_v24  }
 0x340   : > { %1422 = vperm.xlu0 %2510, %v1391_v49   ;;  %1407 = vperm.xlu1 %2509, %v1386_v26  }
 0x344   : > { %1498 = vperm.xlu1 %2509, %v1477_v13  }
 0x348   : > { %1410 = vperm.xlu1 %2509, %v1387_v34  }
 0x34c   : > { %1501 = vperm.xlu1 %2509, %v1478_v0  }
 0x350   : > { %1413 = vperm.xlu1 %2509, %v1388_v9  }
 0x354   : > { %1504 = vperm.xlu1 %2509, %v1479_v48  }
 0x358   : > { %1507 = vperm.xlu1 %2509, %v1480_v29  }
 0x35c   : > { %1510 = vperm.xlu1 %2509, %v1481_v18  }
 0x360   : > { %1513 = vperm.xlu1 %2509, %v1482_v53  }
 0x3b3   : > { %v1402_v11 = vpop.permute.xlu1 %1401  ;;  %v1405_v7 = vpop.permute.xlu0 %1404 }
 0x3b4   : > { %v1431_v36 = vrot.slane %v1405_v7, %v3264_v16  ;;  %v1427_v5 = vrot.slane %v1402_v11, %v3264_v16 }
 0x3b6   : > { %v1456_v44 = vsel %vm1262_vm0, %v1431_v36, %v1427_v5  ;;  %v1221_v36 = vld [vmem:[%s3740_s8] sm:$0xf] }
 0x3b7   : > { %v1493_v54 = vpop.permute.xlu1 %1492  ;;  %v1417_v37 = vpop.permute.xlu0 %1416  ;;  %v1614_v5 = vrot.slane %v1221_v36, %v2765_v3 }
 0x3b8   : > { %v1447_v25 = vrot.slane %v1417_v37, %v3264_v16  ;;  %v1518_v43 = vrot.slane %v1493_v54, %v3264_v16 }
 0x3bb   : > { %v1496_v55 = vpop.permute.xlu1 %1495  ;;  %v1420_v35 = vpop.permute.xlu0 %1419 }
 0x3bc   : > { %v1451_v62 = vrot.slane %v1420_v35, %v3264_v16  ;;  %v1522_v13 = vrot.slane %v1496_v55, %v3264_v16 }
 0x3be   : > { %v1547_v29 = vsel %vm1262_vm0, %v1522_v13, %v1518_v43 }
 0x3bf   : > { %v1408_v30 = vpop.permute.xlu1 %1407  ;;  %v1423_v10 = vpop.permute.xlu0 %1422 }
 0x3c0   : > { %v1435_v52 = vrot.slane %v1408_v30, %v3264_v16  ;;  %v1455_v8 = vrot.slane %v1423_v10, %v3264_v16 }
 0x3c2   : > { %v1457_v51 = vsel %vm1264_vm1, %v1435_v52, %v1456_v44  ;;  %v1656_v52 = vrot.slane %v1221_v36, %v2768_v4 }
 0x3c3   : > { %v1499_v50 = vpop.permute.xlu1 %1498 }
 0x3c4   : > { %v1526_v34 = vrot.slane %v1499_v50, %v3264_v16 }
 0x3c6   : > { %v1548_v53 = vsel %vm1264_vm1, %v1526_v34, %v1547_v29 }
 0x3c7   : > { %v1411_v2 = vpop.permute.xlu1 %1410 }
 0x3c8   : > { %v1439_v59 = vrot.slane %v1411_v2, %v3264_v16 }
 0x3ca   : > { %v1458_v20 = vsel %vm1266_vm4, %v1439_v59, %v1457_v51  ;;  %v1673_v59 = vrot.slane %v1221_v36, %v2787_v23 }
 0x3cb   : > { %v1502_v40 = vpop.permute.xlu1 %1501 }
 0x3cc   : > { %v1530_v0 = vrot.slane %v1502_v40, %v3264_v16  ;;  %v1631_v40 = vrot.slane %v1221_v36, %v2784_v22 }
 0x3ce   : > { %v1549_v7 = vsel %vm1266_vm4, %v1530_v0, %v1548_v53 }
 0x3cf   : > { %v1414_v19 = vpop.permute.xlu1 %1413 }
 0x3d0   : > { %v1443_v38 = vrot.slane %v1414_v19, %v3264_v16 }
 0x3d2   : > { %v1459_v57 = vsel %vm1268_vm5, %v1443_v38, %v1458_v20 }
 0x3d3   : > { %v1505_v14 = vpop.permute.xlu1 %1504  ;;  %v1460_v58 = vsel %vm1270_vm6, %v1447_v25, %v1459_v57 }
 0x3d4   : > { %v1461_v24 = vsel %vm1272_vm7, %v1451_v62, %v1460_v58  ;;  %v1534_v9 = vrot.slane %v1505_v14, %v3264_v16 }
 0x3d5   : > { %v1462_v49 = vsel %vm1274_vm8, %v1455_v8, %v1461_v24 }
 0x3d6   : > { %v1464_v26 = vsel %vm1277_vm9, %v1462_v49, 0.0  ;;  %v1550_v55 = vsel %vm1268_vm5, %v1534_v9, %v1549_v7 }
 0x3d7   : > { %1465 = vadd.xlane.f32.xlu0 %v1464_v26  ;;  %v1508_v12 = vpop.permute.xlu1 %1507 }
 0x3d8   : > { %v1538_v18 = vrot.slane %v1508_v12, %v3264_v16 }
 0x3da   : > { %v1551_v54 = vsel %vm1270_vm6, %v1538_v18, %v1550_v55 }
 0x3db   : > { %v1511_v48 = vpop.permute.xlu1 %1510 }
 0x3dc   : > { %v1542_v11 = vrot.slane %v1511_v48, %v3264_v16 }
 0x3de   : > { %v1552_v37 = vsel %vm1272_vm7, %v1542_v11, %v1551_v54 }
 0x3df   : > { %v1514_v30 = vpop.permute.xlu1 %1513 }
 0x3e0   : > { %v1546_v50 = vrot.slane %v1514_v30, %v3264_v16 }
 0x3e2   : > { %v1553_v2 = vsel %vm1274_vm8, %v1546_v50, %v1552_v37 }
 0x3e3   : > { %v1555_v35 = vsel %vm1277_vm9, %v1553_v2, 0.0 }
 0x3e4   : > { %1556 = vadd.xlane.f32.xlu1 %v1555_v35 }
 0x3ed   : > { %1617 = vbcast.lane.b32.xlu0 %v1614_v5, 256 }
 0x3f1   : > { %1634 = vbcast.lane.b32.xlu0 %v1631_v40, 256 }
 0x3f5   : > { %1659 = vbcast.lane.b32.xlu1 %v1656_v52, 256 }
 0x3f9   : > { %1676 = vbcast.lane.b32.xlu1 %v1673_v59, 256 }
 0x464   : > { %v1466_v44 = vpop.xlane.xlu0 %1465 }
 0x468   : > { %v3518_v8 = vpop.permute.xlu0 %1617 }
 0x46c   : > { %v1635_v43 = vpop.permute.xlu0 %1634 }
 0x471   : > { %v1557_v19 = vpop.xlane.xlu1 %1556 }
 0x472   : > { %v1558_v10 = vadd.f32 %v1557_v19, %v1466_v44 }
 0x474   : > { %v1559_v51 = vmul.f32 0.0625, %v1558_v10 }
 0x475   : > { %v3514_v25 = vpop.permute.xlu1 %1659 }
 0x476   : > { %v1560_v38 = vadd.f32 1e-05, %v1559_v51  ;;  %v1688_v51 = vld [vmem:[%s3742_s10] sm:$0xff] }
 0x478   : > { %2511 = vrsqrt.f32 %v1560_v38  ;;  %v1687_v38 = vld [vmem:[%s3741_s9] sm:$0xff] }
 0x479   : > { %v3525_v12 = vpop.permute.xlu1 %1676 }
 0x482   : > { %v2512_v20 = vpop.eup %2511 }
 0x483   : > { %v1570_v62 = vrot.slane %v2512_v20, %v2768_v4  ;;  %v1566_v57 = vrot.slane %v2512_v20, %v2765_v3  ;;  %v1574_v14 = vrot.slane %v2512_v20, %v2784_v22  ;;  %v1578_v22 = vrot.slane %v2512_v20, %v2787_v23 }
 0x484   : > { %v1586_v11 = vrot.slane %v2512_v20, %v2805_v28  ;;  %v1590_v54 = vrot.slane %v2512_v20, %v2911_v47  ;;  %v1594_v35 = vrot.slane %v2512_v20, %v2961_v41 }
 0x485   : > { %v1646_v58 = vmul.f32 %v1570_v62, %v3409_v21  ;;  %v1645_v24 = vmul.f32 %v1566_v57, %v3397_v39  ;;  %v1604_v49 = vmul.f32 %v1570_v62, %v3382_v46  ;;  %v1603_v26 = vmul.f32 %v1566_v57, %v3386_v33  ;;  %v2518_v62 = vld [vmem:[%s2773_s26 + $0x8] sm:$0xff] }
 0x486   : > { %v1605_v3 = vmul.f32 %v1574_v14, %v3419_v45  ;;  %v1647_v34 = vmul.f32 %v1574_v14, %v3427_v63  ;;  %v1606_v0 = vmul.f32 %v1578_v22, %v3434_v6  ;;  %v1648_v9 = vmul.f32 %v1578_v22, %v3440_v15  ;;  %v2520_v14 = vld [vmem:[%s2773_s26 + $0x28] sm:$0xff] }
 0x487   : > { %v1663_v13 = vmul.f32 %v3514_v25, %v1646_v58  ;;  %v1662_v4 = vmul.f32 %v3514_v25, %v1645_v24  ;;  %v1621_v46 = vmul.f32 %v3518_v8, %v1604_v49  ;;  %v1620_v33 = vmul.f32 %v3518_v8, %v1603_v26  ;;  %v2521_v24 = vld [vmem:[%s2773_s26 + $0x10] sm:$0xff]  ;;  %v2522_v49 = vld [vmem:[%s2773_s26 + $0x18] sm:$0xff] }
 0x488   : > { %v1582_v45 = vrot.slane %v2512_v20, %v2802_v27  ;;  %v1622_v23 = vmul.f32 %v3518_v8, %v1605_v3  ;;  %v1664_v29 = vmul.f32 %v3514_v25, %v1647_v34  ;;  %v1623_v18 = vmul.f32 %v3518_v8, %v1606_v0  ;;  %v2517_v20 = vld [vmem:[%s2773_s26] sm:$0xff] }
 0x489   : > { %v1680_v21 = vadd.f32 %v3525_v12, %v1663_v13  ;;  %v1679_v39 = vadd.f32 %v3525_v12, %v1662_v4  ;;  %v1638_v63 = vadd.f32 %v1635_v43, %v1621_v46  ;;  %v1637_v48 = vadd.f32 %v1635_v43, %v1620_v33 }
 0x48a   : > { %v1665_v53 = vmul.f32 %v3514_v25, %v1648_v9  ;;  %v1639_v7 = vadd.f32 %v1635_v43, %v1622_v23  ;;  %v1681_v6 = vadd.f32 %v3525_v12, %v1664_v29  ;;  %v1607_v15 = vmul.f32 %v1582_v45, %v3447_v56 }
 0x48b   : > { %1701 = vperm.xlu1 %2509, %v1680_v21   ;;  %1698 = vperm.xlu0 %2510, %v1679_v39   ;;  %v1649_v27 = vmul.f32 %v1582_v45, %v3453_v61  ;;  %v1640_v55 = vadd.f32 %v1635_v43, %v1623_v18  ;;  %v1608_v28 = vmul.f32 %v1586_v11, %v3393_v32 }
 0x48c   : > { %v1682_v30 = vadd.f32 %v3525_v12, %v1665_v53  ;;  %v1624_v50 = vmul.f32 %v3518_v8, %v1607_v15  ;;  %v1650_v2 = vmul.f32 %v1586_v11, %v3459_v17  ;;  %v1609_v56 = vmul.f32 %v1590_v54, %v3405_v60 }
 0x48d   : > { %v1666_v37 = vmul.f32 %v3514_v25, %v1649_v27  ;;  %v1651_v61 = vmul.f32 %v1590_v54, %v3465_v42  ;;  %v1625_v47 = vmul.f32 %v3518_v8, %v1608_v28  ;;  %v1610_v32 = vmul.f32 %v1594_v35, %v3415_v31 }
 0x48e   : > { %v1641_v36 = vadd.f32 %v1635_v43, %v1624_v50  ;;  %v1667_v40 = vmul.f32 %v3514_v25, %v1650_v2  ;;  %v1652_v17 = vmul.f32 %v1594_v35, %v3471_v1  ;;  %v1626_v42 = vmul.f32 %v3518_v8, %v1609_v56 }
 0x48f   : > { %1844 = vperm.xlu1 %2509, %v1638_v63   ;;  %1841 = vperm.xlu0 %2510, %v1637_v48   ;;  %v1683_v5 = vadd.f32 %v3525_v12, %v1666_v37  ;;  %v1642_v52 = vadd.f32 %v1635_v43, %v1625_v47  ;;  %v1668_v41 = vmul.f32 %v3514_v25, %v1651_v61 }
 0x490   : > { %v1684_v60 = vadd.f32 %v3525_v12, %v1667_v40  ;;  %v1643_v59 = vadd.f32 %v1635_v43, %v1626_v42  ;;  %v1627_v19 = vmul.f32 %v3518_v8, %v1610_v32  ;;  %v1669_v10 = vmul.f32 %v3514_v25, %v1652_v17  ;;  %v2519_v8 = vld [vmem:[%s2773_s26 + $0x20] sm:$0xff] }
 0x491   : > { %v1685_v44 = vadd.f32 %v3525_v12, %v1668_v41  ;;  %v2604_v25 = vmov 0.0   ;;  %v578_v57 = vadd.f32 %v2518_v62, %v2517_v20  ;;  %v762_v58 = vadd.f32 %v2520_v14, %v2519_v8  ;;  %v2070_v20 = vld [vmem:[%s3747_s15] sm:$0xff]  ;;  %v2071_v8 = vld [vmem:[%s3747_s15 + $0x8] sm:$0xff] }
 0x492   : > { %v1644_v31 = vadd.f32 %v1635_v43, %v1627_v19  ;;  %v1686_v1 = vadd.f32 %v3525_v12, %v1669_v10  ;;  %2392 = vmatprep.subr.mxu0 %v2604_v25  ;;  %2397 = vmatprep.subr.mxu1 %v2604_v25  ;;  %v666_v26 = vadd.f32 %v2522_v49, %v2521_v24  ;;  %v2606_v19 = vmov 0.0|0.0   ;;  %v2072_v49 = vld [vmem:[%s3747_s15 + $0x10] sm:$0xff] }
 0x493   : > { %1847 = vperm.xlu1 %2509, %v1639_v7   ;;  %1704 = vperm.xlu0 %2510, %v1681_v6   ;;  %v2435_v24 = vpack.c.bf16 %v2071_v8, %v2070_v20 }
 0x494   : > { %2393 = vmatpush3.msra.mxu0 %v1688_v51  ;;  %2394 = vmatprep.mubr.msk.f32.mxu0 %vm2605_vm10, %v2604_v25  ;;  %v2353_v51 = vld [vmem:[%s3764_s2 + $0x1] ss:$0 sm:$0xff] }
 0x495   : > { %2398 = vmatpush3.msra.mxu1 %v1687_v38  ;;  %2399 = vmatprep.mubr.msk.f32.mxu1 %vm2605_vm10, %v2604_v25 }
 0x496   : > { %2431 = vmatprep.subr.bf16.mxu0 %v2606_v19  ;;  %2434 = vmatprep.subr.bf16.mxu1 %v2606_v19 }
 0x497   : > { %1850 = vperm.xlu1 %2509, %v1640_v55   ;;  %1707 = vperm.xlu0 %2510, %v1682_v30  }
 0x49b   : > { %1853 = vperm.xlu1 %2509, %v1641_v36   ;;  %1710 = vperm.xlu0 %2510, %v1683_v5  }
 0x49f   : > { %1856 = vperm.xlu1 %2509, %v1642_v52   ;;  %1713 = vperm.xlu0 %2510, %v1684_v60  }
 0x4a3   : > { %1859 = vperm.xlu1 %2509, %v1643_v59   ;;  %1716 = vperm.xlu0 %2510, %v1685_v44   ;;  %v1984_v44 = vld [vmem:[%s3744_s12 + $0x8] sm:$0xff] }
 0x4a7   : > { %1862 = vperm.xlu1 %2509, %v1644_v31   ;;  %1719 = vperm.xlu0 %2510, %v1686_v1   ;;  %v2350_v31 = vld [vmem:[%s3764_s2] ss:$0 sm:$0xff] }
 0x4c6   : > { %579 = vadd.xlane.f32.xlu0 %v578_v57 }
 0x4ca   : > { %763 = vadd.xlane.f32.xlu0 %v762_v58 }
 0x4cb   : > { %667 = vadd.xlane.f32.xlu1 %v666_v26  ;;  %v2073_v26 = vld [vmem:[%s3747_s15 + $0x18] sm:$0xff] }
 0x50a   : > { %v1702_v12 = vpop.permute.xlu1 %1701  ;;  %v1699_v13 = vpop.permute.xlu0 %1698 }
 0x50b   : > { %v1728_v9 = vrot.slane %v1702_v12, %v3264_v16  ;;  %v1724_v45 = vrot.slane %v1699_v13, %v3264_v16  ;;  %v2358_v12 = vld [vmem:[%s3764_s2 + $0x2] ss:$0 sm:$0xff] }
 0x50d   : > { %v1753_v27 = vsel %vm1262_vm0, %v1728_v9, %v1724_v45  ;;  %v2364_v45 = vld [vmem:[%s3743_s11] ss:$0 sm:$0xff] }
 0x50e   : > { %v1845_v4 = vpop.permute.xlu1 %1844  ;;  %v1842_v3 = vpop.permute.xlu0 %1841 }
 0x50f   : > { %v1871_v63 = vrot.slane %v1845_v4, %v3264_v16  ;;  %v1867_v48 = vrot.slane %v1842_v3, %v3264_v16 }
 0x511   : > { %v1896_v55 = vsel %vm1262_vm0, %v1871_v63, %v1867_v48 }
 0x512   : > { %v1848_v34 = vpop.permute.xlu1 %1847  ;;  %v1705_v22 = vpop.permute.xlu0 %1704 }
 0x513   : > { %v1875_v23 = vrot.slane %v1848_v34, %v3264_v16  ;;  %v1732_v29 = vrot.slane %v1705_v22, %v3264_v16  ;;  %v2438_v34 = vpack.c.bf16 %v2073_v26, %v2072_v49 }
 0x515   : > { %v1897_v50 = vsel %vm1264_vm1, %v1875_v23, %v1896_v55  ;;  %v1754_v37 = vsel %vm1264_vm1, %v1732_v29, %v1753_v27 }
 0x516   : > { %v1851_v21 = vpop.permute.xlu1 %1850  ;;  %v1708_v39 = vpop.permute.xlu0 %1707 }
 0x517   : > { %v1879_v18 = vrot.slane %v1851_v21, %v3264_v16  ;;  %v1736_v53 = vrot.slane %v1708_v39, %v3264_v16  ;;  %v2361_v21 = vld [vmem:[%s3735_s3] ss:$0 sm:$0xff] }
 0x519   : > { %v1898_v56 = vsel %vm1266_vm4, %v1879_v18, %v1897_v50  ;;  %v1755_v61 = vsel %vm1266_vm4, %v1736_v53, %v1754_v37  ;;  %v2068_v53 = vld [vmem:[%s3746_s14 + $0x10] sm:$0xff]  ;;  %v2369_v50 = vld [vmem:[%s3748_s16] ss:$0 sm:$0xff] }
 0x51a   : > { %v1854_v46 = vpop.permute.xlu1 %1853  ;;  %v1711_v33 = vpop.permute.xlu0 %1710 }
 0x51b   : > { %v1883_v11 = vrot.slane %v1854_v46, %v3264_v16  ;;  %v1740_v7 = vrot.slane %v1711_v33, %v3264_v16  ;;  %v2066_v33 = vld [vmem:[%s3746_s14] sm:$0xff] }
 0x51d   : > { %v1899_v35 = vsel %vm1268_vm5, %v1883_v11, %v1898_v56  ;;  %v1756_v36 = vsel %vm1268_vm5, %v1740_v7, %v1755_v61  ;;  %v2069_v11 = vld [vmem:[%s3746_s14 + $0x18] sm:$0xff] }
 0x51e   : > { %v1857_v43 = vpop.permute.xlu1 %1856  ;;  %v1714_v0 = vpop.permute.xlu0 %1713  ;;  %v2444_v7 = vpack.c.bf16 %v2069_v11, %v2068_v53 }
 0x51f   : > { %v1887_v30 = vrot.slane %v1857_v43, %v3264_v16  ;;  %v1744_v54 = vrot.slane %v1714_v0, %v3264_v16  ;;  %v2067_v43 = vld [vmem:[%s3746_s14 + $0x8] sm:$0xff] }
 0x520   : > { %v2441_v29 = vpack.c.bf16 %v2067_v43, %v2066_v33 }
 0x521   : > { %v1900_v40 = vsel %vm1270_vm6, %v1887_v30, %v1899_v35  ;;  %v1757_v32 = vsel %vm1270_vm6, %v1744_v54, %v1756_v36  ;;  %v2365_v35 = vld [vmem:[%s3745_s13] ss:$0 sm:$0xff] }
 0x522   : > { %v1860_v6 = vpop.permute.xlu1 %1859  ;;  %v1717_v15 = vpop.permute.xlu0 %1716 }
 0x523   : > { %v1891_v28 = vrot.slane %v1860_v6, %v3264_v16  ;;  %v1748_v2 = vrot.slane %v1717_v15, %v3264_v16 }
 0x525   : > { %v1901_v60 = vsel %vm1272_vm7, %v1891_v28, %v1900_v40  ;;  %v1758_v42 = vsel %vm1272_vm7, %v1748_v2, %v1757_v32 }
 0x526   : > { %v1863_v5 = vpop.permute.xlu1 %1862  ;;  %v1720_v47 = vpop.permute.xlu0 %1719 }
 0x527   : > { %v1895_v17 = vrot.slane %v1863_v5, %v3264_v16  ;;  %v1752_v52 = vrot.slane %v1720_v47, %v3264_v16  ;;  %v1983_v16 = vld [vmem:[%s3744_s12] sm:$0xff] }
 0x528   : > { %v2432_v10 = vpack.c.bf16 %v1984_v44, %v1983_v16 }
 0x529   : > { %v1759_v41 = vsel %vm1274_vm8, %v1752_v52, %v1758_v42  ;;  %v1902_v59 = vsel %vm1274_vm8, %v1895_v17, %v1901_v60 }
 0x52a   : > { %2395 = vmatmul.mubr.msk.f32.vlgmr.msra.gmra.mrb[0].mxu0 %vm1277_vm9, %v1759_v41  ;;  %2400 = vmatmul.mubr.msk.f32.vlgmr.msra.gmra.mrb[0].mxu1 %vm1277_vm9, %v1902_v59 }
 0x52b   : > { %2406 = vmatprep.mubr.msk.f32.mxu0 %vm2605_vm10, %v2604_v25  ;;  %2417 = vmatprep.mubr.msk.f32.mxu1 %vm2605_vm10, %v2604_v25 }
 0x52c   : > { %2433 = vmatpush3.bf16.msra.mxu0 %v2432_v10  ;;  %2436 = vmatpush3.bf16.msra.mxu1 %v2435_v24 }
 0x52d   : > { %2440 = vmatprep.subr.bf16.mxu0 %v2606_v19  ;;  %2437 = vmatprep.subr.bf16.mxu1 %v2606_v19 }
 0x530   : > { %2439 = vmatpush3.bf16.msra.mxu1 %v2438_v34 }
 0x553   : > { %v580_v1 = vpop.xlane.xlu0 %579 }
 0x554   : > { %v581_v62 = vmul.f32 0.00390625, %v580_v1 }
 0x556   : > { %v603_v14 = vmul.f32 %v2350_v31, %v581_v62 }
 0x557   : > { %v764_v13 = vpop.xlane.xlu0 %763 }
 0x558   : > { %v668_v38 = vpop.xlane.xlu1 %667  ;;  %v765_v3 = vmul.f32 0.00390625, %v764_v13 }
 0x559   : > { %v669_v57 = vmul.f32 0.00390625, %v668_v38 }
 0x55a   : > { %v776_v22 = vmul.f32 %v2358_v12, %v765_v3 }
 0x55b   : > { %v680_v58 = vmul.f32 %v2353_v51, %v669_v57 }
 0x55d   : > { %v742_v4 = vadd.f32 %v680_v58, %v603_v14 }
 0x55f   : > { %v838_v39 = vadd.f32 %v776_v22, %v742_v4 }
 0x561   : > { %v862_v46 = vadd.f32 %v2361_v21, %v838_v39 }
 0x563   : > { %2418 = vmatmul.mubr.msk.f32.vlgmr.msra.gmra.mrb[2].mxu1 %vm2074_vm11, %v862_v46  ;;  %2236 = vrot.lane.b32.xlu1 %v862_v46, %s2607_s19 }
 0x5d5   : > { %v2237_v40 = vpop.permute.xlu1 %2236 }
 0x5fd   : > { %v1828_v0 = vpop.f32.mrb[0].mxu0  ;;  %v1971_v9 = vpop.f32.mrb[0].mxu1 }
 0x5fe   : > { %v1972_v63 = vadd.f32 %v1971_v9, %v1828_v0  ;;  %v2396_v48 = vpop.f32.mrb[1].mxu0  ;;  %v2401_v23 = vpop.f32.mrb[1].mxu1 }
 0x600   : > { %v1982_v18 = vadd.f32 %v2364_v45, %v1972_v63 }
 0x602   : > { %2407 = vmatmul.mubr.msk.f32.vlgmr.msra.gmra.mrb[2].mxu0 %vm1992_vm12, %v1982_v18  ;;  %2148 = vrot.lane.b32.xlu0 %v1982_v18, %s2608_s22  ;;  %s2372_s22 = sshll.u32 %s2593_s27, 7  ;;  %s2610_s27 = smov [#allocation2]  }
 0x603   : > { %2442 = vmatpush3.bf16.msra.mxu0 %v2441_v29  ;;  %2428 = vmatprep.mubr.msk.f32.mxu0 %vm2605_vm10, %v2604_v25  ;;  %s3684_s26 = scalar_lea.hbm %s3749_s17, %s2372_s22  ;;  %s2527_s18 = sshll.u32 %s2610_s27, 4  ;;  %s2528_s18 = int_to_ptr.vmem [resolvable:$false] %s2527_s18 }
 0x604   : > { %2443 = vmatprep.subr.bf16.mxu0 %v2606_v19  ;;  %s2529_s2 = scalar_lea.vmem %s2528_s18, 256  ;;  %p2530_p1 = scmp.lt.s32.totalorder %s3686_s0, %s2528_s18 }
 0x607   : > { %2445 = vmatpush3.bf16.msra.mxu0 %v2444_v7 }
 0x636   : > { %v2144_v6 = vpop.f32.mrb[2].mxu1 }
 0x637   : > { %v2419_v15 = vpop.f32.mrb[3].mxu1 }
 0x674   : > { %v2149_v27 = vpop.permute.xlu0 %2148 }
 0x675   : > { %2429 = vmatmul.mubr.msk.f32.vlgmr.msra.gmra.mrb[4].mxu0 %vm2074_vm11, %v2149_v27 }
 0x6d5   : > { %v2062_v55 = vpop.f32.mrb[2].mxu0 }
 0x6d6   : > { %v2408_v30 = vpop.f32.mrb[3].mxu0  ;;  %v2063_v36 = vadd.f32 %v2365_v35, %v2062_v55 }
 0x748   : > { %v2218_v54 = vpop.f32.mrb[4].mxu0 }
 0x749   : > { %v2219_v37 = vadd.f32 %v2218_v54, %v2144_v6  ;;  %v2430_v28 = vpop.f32.mrb[5].mxu0 }
 0x74b   : > { %v2229_v2 = vadd.f32 %v2369_v50, %v2219_v37 }
 0x74d   : > { %v2370_v56 = vmul.f32 -1.442695, %v2229_v2 }
 0x74f   : > { %2513 = vpow2.f32 %v2370_v56 }
 0x759   : > { %v2514_v25 = vpop.eup %2513 }
 0x75a   : > { %v2233_v61 = vadd.f32 1.0, %v2514_v25 }
 0x75c   : > { %2515 = vrcp.f32 %v2233_v61 }
 0x766   : > { %v2516_v5 = vpop.eup %2515 }
 0x767   : > { %v2240_v47 = vmul.f32 %v2516_v5, %v2063_v36  ;;  %v2239_v32 = vmul.f32 %v2516_v5, %v2237_v40 }
 0x769   : > { %2242 = vrot.lane.b32.xlu1 %v2240_v47, %s2607_s19  ;;  %s2252_s19 = scalar_lea.sflag [#allocation3], %s563_s28 }
 0x7db   : > { %v2243_v17 = vpop.permute.xlu1 %2242 }
 0x7dc   : > { %v2245_v52 = vadd.f32 %v2243_v17, %v2239_v32 }
 0x7de   : > { %2247 = vrot.lane.b32.xlu0 %v2245_v52, %s2609_s20  ;;  %s2523_s20 = scalar_lea.vmem %s3686_s0, 128 }
 0x7df   : > { %p2524_p12 = scmp.ne.s32.totalorder %s3686_s0, %s2523_s20  ;;  %p2531_p2 = scmp.lt.s32.totalorder %s2529_s2, %s2523_s20 }
 0x7e1   : > { %p2525_p13 = pnand %p2524_p12, %p2741_p4  ;;  %p2532_p3 = por %p2531_p2, %p2530_p1 }
 0x7e3   : > { %p2526_p0 = pneg %p2525_p13 }
 0x7e5   : > { %p2533_p5 = pnand %p2532_p3, %p2526_p0 }
 0x850   : > { %v2248_v60 = vpop.permute.xlu0 %2247 }
 0x851   : > { %2250 = vst.msk [vmem:[%s565_s23] sm:$0xff] %vm2074_vm11, %v2248_v60 }
 0x852   : > { %2536 = shalt.err (!%p2533_p5)
}
 0x853   : > { %s2537_s28 = scalar_lea.hbm %s3684_s26, 128  ;;  %s2541_s30 = scalar_lea.hbm %s3749_s17, 256 }
 0x854   : > { %p2538_p6 = scmp.ne.s32.totalorder %s3684_s26, %s2537_s28  ;;  %p2542_p10 = scmp.lt.u32.totalorder %s3684_s26, %s3749_s17 }
 0x855   : > { %p2543_p11 = scmp.lt.u32.totalorder %s2541_s30, %s2537_s28  ;;  %p2545_p13 = scmp.lt.u32.totalorder %s2537_s28, %s3684_s26 }
 0x856   : > { %p2539_p7 = pnand %p2538_p6, %p2741_p4 }
 0x857   : > { %p2544_p12 = por %p2543_p11, %p2542_p10 }
 0x858   : > { %p2540_p9 = pneg %p2539_p7 }
 0x859   : > { %p2546_p0 = por %p2545_p13, %p2544_p12 }
 0x85b   : > { %p2547_p1 = pnand %p2546_p0, %p2540_p9 }
 0x85d   : > { %2550 = shalt.err (!%p2547_p1)
}
 0x85e   : > { %2447 = dma.vmem_to_hbm [thread:$0]  (%p2741_p4), %s3686_s0, 128, %s3684_s26, %s2252_s19  }
 0x85f PF: > { %p2453_p2 = scmp.ge.s32.totalorder %s2601_s29, 2  ;;  %s2278_s20 = sand.u32 1, %s2581_s24  }
 0x860   : > { %s2279_s2 = scalar_lea.sflag [#allocation3], %s2278_s20 }
 0x861   : > { %p2450_p3 = pnand %p2453_p2, %p2748_p8 }
 0x863   : > { %2576 = dma.done.wait (!%p2450_p3), %s2279_s2, 128  }
 0x864   : > { %2578 = vsyncadd (!%p2450_p3), %s2279_s2, 4294967168  ;;  %s30_s29 = sadd.s32 1, %s2601_s29   ;;  %s3765_s28 = sld [smem:[#allocation5_spill]] }
 0x865   : > { %p27_p5 = scmp.ge.s32.totalorder %s30_s29, 4   ;;  %s3766_s26 = sld [smem:[#allocation8_spill]] }
 0x866   : > { %s3767_s27 = sld [smem:[#allocation6_spill]]  ;;  %s3768_s1 = sld [smem:[#allocation7_spill]] }
 0x867   : > { %s3769_s24 = smov %s2585_s25  ;;  %29 = sbr.rel (!%p27_p5) target bundleno = 8 (0x8), region = 129 }
 0x86a   : > { %s3770_s25 = smov %s3765_s28 }
 0x86c   : > { %s3771_s28 = smov %s3768_s1 }
 0x86e   :  { %2284 = vsyncpa [#allocation3], 1 }
 0x86f   :  { %2286 = vsyncpa [#allocation3 + $0x1], 1 }

</bundles_post_ra>
